<compile_context>
chip_gen: v5e
topology: v5e:2x2
jax: 0.10.0
libtpu: 0.0.40
codegen_flags: <defaults>
</compile_context>

<pallas_src>
import functools

import jax
import jax.numpy as jnp
from jax.experimental import pallas as pl
from jax.experimental.pallas import tpu as pltpu


VMEM_LIMIT = 48 * 1024 * 1024  # <= v7x's 64 MiB physical VMEM per TensorCore


def _round_up(x, m):
    return (x + m - 1) // m * m


# ---------------------------------------------------------------------------
# Pallas kernels
# ---------------------------------------------------------------------------
def _conv_matmul_kernel(x_ref, w_ref, b_ref, o_ref, *, apply_relu):
    # out = relu((x @ w) + bias)   (BatchNorm already folded into w/b)
    acc = jnp.dot(x_ref[...], w_ref[...], preferred_element_type=jnp.float32)
    acc = acc + b_ref[...]                     # (1, Np) broadcasts over (tm, Np)
    if apply_relu:
        acc = jnp.maximum(acc, 0.0)
    o_ref[...] = acc


def conv_matmul(x, w, b, *, apply_relu=True, tm=1024):
    """Row-tiled fused matmul: relu(x @ w + b).

    K (reduction) is small for every conv layer, so the full K and the full
    (padded) output-channel dim live in VMEM; only M is tiled and pipelined.
    Output channels are padded to a multiple of 128 (lane-dense stores) and
    sliced back afterwards.
    """
    M, K = x.shape
    Kw, N = w.shape
    assert K == Kw
    Np = _round_up(N, 128)
    tm = min(tm, _round_up(M, 8))
    Mp = _round_up(M, tm)

    xp = jnp.pad(x, ((0, Mp - M), (0, 0))) if Mp != M else x
    wp = jnp.pad(w, ((0, 0), (0, Np - N))) if Np != N else w
    bp = jnp.pad(b, ((0, Np - N),)) if Np != N else b

    out = pl.pallas_call(
        functools.partial(_conv_matmul_kernel, apply_relu=apply_relu),
        out_shape=jax.ShapeDtypeStruct((Mp, Np), jnp.float32),
        grid=(Mp // tm,),
        in_specs=[
            pl.BlockSpec((tm, K), lambda i: (i, 0)),
            pl.BlockSpec((K, Np), lambda i: (0, 0)),
            pl.BlockSpec((1, Np), lambda i: (0, 0)),
        ],
        out_specs=pl.BlockSpec((tm, Np), lambda i: (i, 0)),
        compiler_params=pltpu.CompilerParams(
            dimension_semantics=("parallel",),
            vmem_limit_bytes=VMEM_LIMIT,
        ),
    )(xp, wp, bp.reshape(1, Np))
    return out[:M, :N]


def _fc_head_kernel(x_ref, w1_ref, b1_ref, w2_ref, o_ref, acc_ref, *,
                    compute_dtype):
    # fc1 (K-tiled, f32 accumulate) + folded BN + ReLU + fc2F, all in one kernel.
    k = pl.program_id(0)

    @pl.when(k == 0)
    def _():
        acc_ref[...] = jnp.zeros_like(acc_ref)

    acc_ref[...] += jnp.dot(x_ref[...].astype(compute_dtype), w1_ref[...],
                            preferred_element_type=jnp.float32)

    @pl.when(k == pl.num_programs(0) - 1)
    def _():
        h = jnp.maximum(acc_ref[...] + b1_ref[...], 0.0)      # fc1 + BN + ReLU
        # fc2F (no bias): small (Mp, Np) @ (Np, 128) matmul; only col 0 is real.
        o_ref[...] = jnp.dot(h, w2_ref[...], preferred_element_type=jnp.float32)


def fc_head(x, w1, b1, w2, *, tk=2048):
    """Fused fc1 + BatchNorm1d + ReLU (+ Dropout=identity) + fc2F.

    K is tiled and the bf16 fc1 weight is streamed once through VMEM with a
    resident f32 accumulator; fc2F is a tiny matmul in the epilogue (avoids a
    second pallas_call with a lane-width-1 output and an (M,1000) HBM trip).
    """
    M, K = x.shape
    K1, N = w1.shape
    assert K == K1 and w2.shape[0] == N
    Mp = _round_up(M, 8)
    Np = _round_up(N, 128)
    tk = min(tk, _round_up(K, 128))
    Kp = _round_up(K, tk)

    xp = jnp.pad(x, ((0, Mp - M), (0, Kp - K)))
    w1p = jnp.pad(w1, ((0, Kp - K), (0, Np - N)))
    b1p = jnp.pad(b1, ((0, Np - N),)).reshape(1, Np)
    w2p = jnp.pad(w2.astype(jnp.float32), ((0, Np - N), (0, 128 - w2.shape[1])))

    out = pl.pallas_call(
        functools.partial(_fc_head_kernel, compute_dtype=w1.dtype),
        out_shape=jax.ShapeDtypeStruct((Mp, 128), jnp.float32),
        grid=(Kp // tk,),
        in_specs=[
            pl.BlockSpec((Mp, tk), lambda k: (0, k)),
            pl.BlockSpec((tk, Np), lambda k: (k, 0)),
            pl.BlockSpec((1, Np), lambda k: (0, 0)),
            pl.BlockSpec((Np, 128), lambda k: (0, 0)),
        ],
        out_specs=pl.BlockSpec((Mp, 128), lambda k: (0, 0)),
        scratch_shapes=[pltpu.VMEM((Mp, Np), jnp.float32)],
        compiler_params=pltpu.CompilerParams(
            dimension_semantics=("arbitrary",),
            vmem_limit_bytes=VMEM_LIMIT,
        ),
    )(xp, w1p, b1p, w2p)
    return out[:M, :1]


def _max4_kernel(a_ref, b_ref, c_ref, d_ref, o_ref):
    o_ref[...] = jnp.maximum(jnp.maximum(a_ref[...], b_ref[...]),
                             jnp.maximum(c_ref[...], d_ref[...]))


def maxpool_2x2_pad1(x, *, tm=1024):
    """PyTorch MaxPool2d(kernel_size=2, stride=2, padding=1) on NHWC input."""
    # TODO(synk): fuse the pool into the preceding conv kernel's epilogue (or do
    # the strided window reads in-kernel) to avoid materializing 4 strided slabs.
    N, H, W, C = x.shape
    Ho, Wo = H // 2 + 1, W // 2 + 1
    # pad with -inf so padded positions never win the max (matches PyTorch)
    xp = jnp.pad(
        x,
        ((0, 0), (1, 2 * Ho - H - 1), (1, 2 * Wo - W - 1), (0, 0)),
        constant_values=-jnp.inf,
    )
    slabs = [
        xp[:, 0::2, 0::2, :],
        xp[:, 0::2, 1::2, :],
        xp[:, 1::2, 0::2, :],
        xp[:, 1::2, 1::2, :],
    ]
    M = N * Ho * Wo
    tm = min(tm, _round_up(M, 8))
    Mp = _round_up(M, tm)
    slabs2d = [jnp.pad(s.reshape(M, C), ((0, Mp - M), (0, 0))) for s in slabs]

    spec = pl.BlockSpec((tm, C), lambda i: (i, 0))
    out2d = pl.pallas_call(
        _max4_kernel,
        out_shape=jax.ShapeDtypeStruct((Mp, C), jnp.float32),
        grid=(Mp // tm,),
        in_specs=[spec, spec, spec, spec],
        out_specs=spec,
        compiler_params=pltpu.CompilerParams(
            dimension_semantics=("parallel",),
            vmem_limit_bytes=VMEM_LIMIT,
        ),
    )(*slabs2d)
    return out2d[:M].reshape(N, Ho, Wo, C)


# ---------------------------------------------------------------------------
# JAX glue
# ---------------------------------------------------------------------------
def im2col_3x3(x):
    """'same' 3x3 patches. x: (N, H, W, C) -> (N*H*W, 9*C), tap-major (dy, dx, c)."""
    # TODO(synk): do the 9-tap gather inside the conv kernel from a haloed VMEM
    # tile instead of materializing the 9x-duplicated matrix in HBM.
    N, H, W, C = x.shape
    xp = jnp.pad(x, ((0, 0), (1, 1), (1, 1), (0, 0)))
    cols = [xp[:, dy:dy + H, dx:dx + W, :] for dy in range(3) for dx in range(3)]
    patches = jnp.concatenate(cols, axis=-1)
    return patches.reshape(N * H * W, 9 * C)


def fold_bn(w, b, gamma, beta, mean, var, eps=1e-5):
    """Fold eval-mode BatchNorm into the preceding matmul's weight and bias."""
    scale = gamma / jnp.sqrt(var + eps)
    w_f = w.astype(jnp.float32) * scale[None, :]
    b_f = (b.astype(jnp.float32) - mean) * scale + beta
    return w_f.astype(w.dtype), b_f


def init_params(key, flat_dim):
    ks = jax.random.split(key, 8)

    def w(k, shape, s=0.05):
        return (s * jax.random.normal(k, shape)).astype(jnp.float32)

    p = {
        "conv1_w": w(ks[0], (264, 1)),
        "conv1_b": w(ks[6], (1,), 0.01),
        "conv2_w": w(ks[1], (3, 3, 1, 32)),
        "conv2_b": jnp.zeros((32,), jnp.float32),
        "conv3_w": w(ks[2], (3, 3, 32, 64)),
        "conv3_b": jnp.zeros((64,), jnp.float32),
        "conv4_w": w(ks[3], (3, 3, 64, 128)),
        "conv4_b": jnp.zeros((128,), jnp.float32),
        # fc1 weight kept in bf16: it dominates HBM traffic at the real size
        # (430 MB f32 -> 215 MB bf16); accumulation stays f32 in-kernel.
        "fc1_w": w(ks[4], (flat_dim, 1000), 0.02).astype(jnp.bfloat16),
        "fc1_b": jnp.zeros((1000,), jnp.float32),
        "fc2F_w": w(ks[5], (1000, 1), 0.02),  # no bias, as in the module
    }
    # BatchNorm params at PyTorch defaults (eval): gamma=1, beta=0, mean=0, var=1
    for name, c in (("bn2", 32), ("bn3", 64), ("bn4", 128), ("bn5", 1000)):
        p[name] = (jnp.ones((c,), jnp.float32), jnp.zeros((c,), jnp.float32),
                   jnp.zeros((c,), jnp.float32), jnp.ones((c,), jnp.float32))
    return p


def cnn_img_v2w0_forward(params, img_nchw, y=None):
    """Matches CNN_img_V2w0.forward(img, y); `y` is unused (as in PyTorch)."""
    del y
    N, C, H, W = img_nchw.shape
    x = jnp.transpose(img_nchw, (0, 2, 3, 1)).astype(jnp.float32)  # NHWC

    # layer1: Conv2d(264, 1, k=1, 'same') + ReLU   (1x1 conv == per-pixel matmul)
    # TODO(synk): fuse layer1 into layer2's kernel to avoid the lane-width-1
    # intermediate activation.
    out = conv_matmul(x.reshape(N * H * W, C), params["conv1_w"],
                      params["conv1_b"], apply_relu=True)
    out = out.reshape(N, H, W, 1)

    # layer2: Conv2d(1, 32, 3, 'same') + BN + ReLU + MaxPool(2, 2, pad=1)
    w2, b2 = fold_bn(params["conv2_w"].reshape(9 * 1, 32), params["conv2_b"],
                     *params["bn2"])
    out = conv_matmul(im2col_3x3(out), w2, b2, apply_relu=True)
    out = maxpool_2x2_pad1(out.reshape(N, H, W, 32))
    _, H, W, _ = out.shape

    # layer3: Conv2d(32, 64, 3, 'same') + BN + ReLU + MaxPool
    w3, b3 = fold_bn(params["conv3_w"].reshape(9 * 32, 64), params["conv3_b"],
                     *params["bn3"])
    out = conv_matmul(im2col_3x3(out), w3, b3, apply_relu=True)
    out = maxpool_2x2_pad1(out.reshape(N, H, W, 64))
    _, H, W, _ = out.shape

    # layer4: Conv2d(64, 128, 3, 'same') + BN + ReLU + MaxPool
    w4, b4 = fold_bn(params["conv4_w"].reshape(9 * 64, 128), params["conv4_b"],
                     *params["bn4"])
    out = conv_matmul(im2col_3x3(out), w4, b4, apply_relu=True)
    out = maxpool_2x2_pad1(out.reshape(N, H, W, 128))
    _, H, W, _ = out.shape

    # flatten in PyTorch NCHW order: out.view(N, -1)
    flat = jnp.transpose(out, (0, 3, 1, 2)).reshape(N, -1)

    # layer5 (fc1 + BatchNorm1d + ReLU + Dropout[eval=id]) + fc2F, fused.
    w1, b1 = fold_bn(params["fc1_w"], params["fc1_b"], *params["bn5"])
    out = fc_head(flat, w1, b1, params["fc2F_w"])
    return out  # (N, 1)


if __name__ == "__main__":
    key = jax.random.PRNGKey(0)
    k_img, k_y, k_p = jax.random.split(key, 3)

    N, C, H, W = 2, 264, 16, 16  # small demo spatial size (canonical model: 224x224)
    img = jax.random.normal(k_img, (N, C, H, W), jnp.float32)
    y = jax.random.normal(k_y, (N, 1), jnp.float32)  # unused by forward, as in PyTorch

    # flattened dim after three MaxPool(2,2,pad=1): h -> h//2 + 1, three times
    h = H
    for _ in range(3):
        h = h // 2 + 1
    flat_dim = h * h * 128  # 3*3*128 = 1152 here; 29*29*128 for 224x224 input

    params = init_params(k_p, flat_dim)

    out = jax.block_until_ready(cnn_img_v2w0_forward(params, img, y))
    assert out.shape == (N, 1), out.shape
    assert jnp.all(jnp.isfinite(out))
    print("KERNEL_OK")
</pallas_src>

<mosaic_0001>
module attributes {stable_mosaic.version = 11 : i64} {
  func.func @_conv_matmul_kernel(%arg0: i32, %arg1: memref<512x264xf32, #tpu.memory_space<vmem>>, %arg2: memref<264x128xf32, #tpu.memory_space<vmem>>, %arg3: memref<1x128xf32, #tpu.memory_space<vmem>>, %arg4: memref<512x128xf32, #tpu.memory_space<vmem>>) attributes {dimension_semantics = [#tpu.dimension_semantics<parallel>], iteration_bounds = array<i64: 1>, scalar_prefetch = 0 : i64, scratch_operands = 0 : i64, tpu.core_type = #tpu.core_type<tc>, window_params = [{transform_indices = @transform_0, window_bounds = array<i64: 512, 264>}, {pipeline_mode = #tpu.pipeline_mode<synchronous>, transform_indices = @transform_1, window_bounds = array<i64: 264, 128>}, {pipeline_mode = #tpu.pipeline_mode<synchronous>, transform_indices = @transform_2, window_bounds = array<i64: 1, 128>}, {transform_indices = @transform_3, window_bounds = array<i64: 512, 128>}]} {
    %c0 = arith.constant 0 : index
    %c0_0 = arith.constant 0 : index
    %0 = vector.load %arg1[%c0, %c0_0] : memref<512x264xf32, #tpu.memory_space<vmem>>, vector<512x264xf32>
    %c0_1 = arith.constant 0 : index
    %c0_2 = arith.constant 0 : index
    %1 = vector.load %arg2[%c0_1, %c0_2] : memref<264x128xf32, #tpu.memory_space<vmem>>, vector<264x128xf32>
    %cst = arith.constant dense<0.000000e+00> : vector<512x128xf32>
    %2 = tpu.matmul %0, %1, %cst {dimension_numbers = #tpu.dot_dimension_numbers<[1], [0], [0], [1], [0, 0, 1, 1], [], []>} : vector<512x264xf32>, vector<264x128xf32>, vector<512x128xf32> -> vector<512x128xf32>
    %c0_3 = arith.constant 0 : index
    %c0_4 = arith.constant 0 : index
    %3 = vector.load %arg3[%c0_3, %c0_4] : memref<1x128xf32, #tpu.memory_space<vmem>>, vector<1x128xf32>
    %4 = vector.broadcast %3 : vector<1x128xf32> to vector<512x128xf32>
    %5 = arith.addf %2, %4 : vector<512x128xf32>
    %cst_5 = arith.constant 0.000000e+00 : f32
    %6 = vector.broadcast %cst_5 : f32 to vector<512x128xf32>
    %7 = arith.maximumf %5, %6 : vector<512x128xf32>
    %c0_6 = arith.constant 0 : index
    %c0_7 = arith.constant 0 : index
    %8 = vector.load %arg4[%c0_6, %c0_7] : memref<512x128xf32, #tpu.memory_space<vmem>>, vector<512x128xf32>
    tpu.vector_store %arg4[%c0_6, %c0_7], %7 {strides = array<i32>} : memref<512x128xf32, #tpu.memory_space<vmem>>, vector<512x128xf32>,
    return
  }
  func.func @transform_0(%arg0: i32) -> (i32, i32) {
    %c0_i32 = arith.constant 0 : i32
    %c0_i32_0 = arith.constant 0 : i32
    return %arg0, %c0_i32 : i32, i32
  }
  func.func @transform_1(%arg0: i32) -> (i32, i32) {
    %c0_i32 = arith.constant 0 : i32
    %c0_i32_0 = arith.constant 0 : i32
    %c0_i32_1 = arith.constant 0 : i32
    return %c0_i32, %c0_i32_0 : i32, i32
  }
  func.func @transform_2(%arg0: i32) -> (i32, i32) {
    %c0_i32 = arith.constant 0 : i32
    %c0_i32_0 = arith.constant 0 : i32
    %c0_i32_1 = arith.constant 0 : i32
    return %c0_i32, %c0_i32_0 : i32, i32
  }
  func.func @transform_3(%arg0: i32) -> (i32, i32) {
    %c0_i32 = arith.constant 0 : i32
    %c0_i32_0 = arith.constant 0 : i32
    return %arg0, %c0_i32 : i32, i32
  }
}

</mosaic_0001>

<bundles_post_ra>
// kernel: tpu_custom_call.1
= control target key start
LH: loop header
LB: loop body
LE: loop exit
PB: predicated region body
PF: predicated region fallthrough
CT: control target
= control target key end

     0   :  { %vm244_vm0 = vcmask 64512   ;;  %s2371_s0 = inlined_call_operand.vmem [shape: f32[512,264], index: 0, kind: input, shape index: {}]   ;;  %s2372_s1 = inlined_call_operand.vmem [shape: f32[264,128], index: 1, kind: input, shape index: {}]   ;;  %s2373_s2 = inlined_call_operand.vmem [shape: f32[1,128], index: 2, kind: input, shape index: {}]   ;;  %s2374_s3 = inlined_call_operand.hbm [shape: f32[512,128], index: 3, kind: output, shape index: {}]  }
   0x1   :  { %v222_v0 = vld [vmem:[%s2372_s1 + $0x78] sm:$0xff]  ;;  %v1367_v1 = vld [vmem:[%s2372_s1 + $0x100] sm:$0xff]  ;;  %v17_v2 = vld [vmem:[%s2371_s0 + $0x10] sm:$0xff] }
   0x2   :  { %437 = vmatpush.msra.mxu0 %v222_v0  ;;  %1274 = vmatpush.msra.mxu3 %v222_v0  ;;  %v221_v3 = vld [vmem:[%s2372_s1 + $0x70] sm:$0xff]  ;;  %v1378_v4 = vld [vmem:[%s2372_s1 + $0xf8] sm:$0xff]  ;;  %v220_v5 = vld [vmem:[%s2372_s1 + $0x68] sm:$0xff] }
   0x3   :  { %870 = vmatpush.msra.mxu2 %v1367_v1  ;;  %646 = vmatpush.msra.mxu1 %v1378_v4  ;;  %v1388_v6 = vld [vmem:[%s2372_s1 + $0xf0] sm:$0xff]  ;;  %v1394_v7 = vld [vmem:[%s2372_s1 + $0xe8] sm:$0xff]  ;;  %v219_v8 = vld [vmem:[%s2372_s1 + $0x60] sm:$0xff] }
   0x4   :  { %1210 = vmatmul.msk.f32.vlgmr.msra.gmra.mxu2 %vm244_vm0, %v17_v2  ;;  %438 = vmatpush.msra.mxu0 %v221_v3  ;;  %v1403_v9 = vld [vmem:[%s2372_s1 + $0xe0] sm:$0xff]  ;;  %v218_v10 = vld [vmem:[%s2372_s1 + $0x58] sm:$0xff]  ;;  %v20_v12 = vld [vmem:[%s2371_s0 + $0x28] sm:$0xff] }
   0x5   :  { %1275 = vmatpush.msra.mxu3 %v221_v3  ;;  %647 = vmatpush.msra.mxu1 %v1388_v6  ;;  %v1412_v11 = vld [vmem:[%s2372_s1 + $0xd8] sm:$0xff]  ;;  %v217_v13 = vld [vmem:[%s2372_s1 + $0x50] sm:$0xff]  ;;  %v216_v15 = vld [vmem:[%s2372_s1 + $0x48] sm:$0xff] }
   0x6   :  { %439 = vmatpush.msra.mxu0 %v220_v5  ;;  %v1424_v14 = vld [vmem:[%s2372_s1 + $0xd0] sm:$0xff]  ;;  %v1434_v16 = vld [vmem:[%s2372_s1 + $0xc8] sm:$0xff]  ;;  %v215_v17 = vld [vmem:[%s2372_s1 + $0x40] sm:$0xff] }
   0x7   :  { %1276 = vmatpush.msra.mxu3 %v220_v5  ;;  %648 = vmatpush.msra.mxu1 %v1394_v7  ;;  %v1443_v18 = vld [vmem:[%s2372_s1 + $0xc0] sm:$0xff]  ;;  %v214_v19 = vld [vmem:[%s2372_s1 + $0x38] sm:$0xff] }
   0x8   :  { %440 = vmatpush.msra.mxu0 %v219_v8  ;;  %v1452_v20 = vld [vmem:[%s2372_s1 + $0xb8] sm:$0xff] }
   0x9   :  { %1277 = vmatpush.msra.mxu3 %v219_v8  ;;  %649 = vmatpush.msra.mxu1 %v1403_v9 }
   0xa   :  { %441 = vmatpush.msra.mxu0 %v218_v10 }
   0xb   :  { %1278 = vmatpush.msra.mxu3 %v218_v10  ;;  %650 = vmatpush.msra.mxu1 %v1412_v11 }
   0xc   :  { %1211 = vmatmul.msk.f32.gmra.mxu2 %vm244_vm0, %v20_v12  ;;  %442 = vmatpush.msra.mxu0 %v217_v13 }
   0xd   :  { %1279 = vmatpush.msra.mxu3 %v217_v13  ;;  %651 = vmatpush.msra.mxu1 %v1424_v14 }
   0xe   :  { %443 = vmatpush.msra.mxu0 %v216_v15 }
   0xf   :  { %1280 = vmatpush.msra.mxu3 %v216_v15  ;;  %652 = vmatpush.msra.mxu1 %v1434_v16 }
  0x10   :  { %444 = vmatpush.msra.mxu0 %v215_v17 }
  0x11   :  { %8 = vsyncpa [#allocation3], 0  ;;  %1281 = vmatpush.msra.mxu3 %v215_v17  ;;  %653 = vmatpush.msra.mxu1 %v1443_v18  ;;  %v23_v21 = vld [vmem:[%s2371_s0 + $0x40] sm:$0xff]  ;;  %v213_v22 = vld [vmem:[%s2372_s1 + $0x30] sm:$0xff]  ;;  %s1198_s22 = sshll.u32 %s2374_s3, 4  ;;  %s1339_s23 = smov 128   ;;  %s1199_s22 = int_to_ptr.hbm [resolvable:$true] %s1198_s22 }
  0x12   :  { %445 = vmatpush.msra.mxu0 %v214_v19  ;;  %v1464_v23 = vld [vmem:[%s2372_s1 + $0xb0] sm:$0xff]  ;;  %v212_v24 = vld [vmem:[%s2372_s1 + $0x28] sm:$0xff]  ;;  %v211_v26 = vld [vmem:[%s2372_s1 + $0x20] sm:$0xff]  ;;  %s1340_s24 = smov 8  }
  0x13   :  { %1282 = vmatpush.msra.mxu3 %v214_v19  ;;  %654 = vmatpush.msra.mxu1 %v1452_v20  ;;  %v1474_v25 = vld [vmem:[%s2372_s1 + $0xa8] sm:$0xff]  ;;  %v1483_v27 = vld [vmem:[%s2372_s1 + $0xa0] sm:$0xff]  ;;  %v210_v28 = vld [vmem:[%s2372_s1 + $0x18] sm:$0xff] }
  0x14   :  { %1212 = vmatmul.msk.f32.gmra.mxu2 %vm244_vm0, %v23_v21  ;;  %446 = vmatpush.msra.mxu0 %v213_v22  ;;  %v1492_v29 = vld [vmem:[%s2372_s1 + $0x98] sm:$0xff]  ;;  %v209_v31 = vld [vmem:[%s2372_s1 + $0x10] sm:$0xff]  ;;  %v208_v33 = vld [vmem:[%s2372_s1 + $0x8] sm:$0xff] }
  0x15   :  { %1283 = vmatpush.msra.mxu3 %v213_v22  ;;  %655 = vmatpush.msra.mxu1 %v1464_v23  ;;  %v26_v30 = vld [vmem:[%s2371_s0 + $0x58] sm:$0xff]  ;;  %v225_v32 = vld [vmem:[%s2372_s1 + $0x90] sm:$0xff]  ;;  %v224_v34 = vld [vmem:[%s2372_s1 + $0x88] sm:$0xff] }
  0x16   :  { %447 = vmatpush.msra.mxu0 %v212_v24  ;;  %v207_v35 = vld [vmem:[%s2372_s1] sm:$0xff]  ;;  %v156_v37 = vld [vmem:[%s2371_s0 + $0x468] sm:$0xff]  ;;  %v29_v40 = vld [vmem:[%s2371_s0 + $0x70] sm:$0xff] }
  0x17   :  { %1284 = vmatpush.msra.mxu3 %v212_v24  ;;  %656 = vmatpush.msra.mxu1 %v1474_v25  ;;  %v15_v36 = vld [vmem:[%s2371_s0] sm:$0xff]  ;;  %v16_v39 = vld [vmem:[%s2371_s0 + $0x8] sm:$0xff]  ;;  %v18_v41 = vld [vmem:[%s2371_s0 + $0x18] sm:$0xff] }
  0x18   :  { %448 = vmatpush.msra.mxu0 %v211_v26  ;;  %v223_v38 = vld [vmem:[%s2372_s1 + $0x80] sm:$0xff]  ;;  %v32_v44 = vld [vmem:[%s2371_s0 + $0x88] sm:$0xff]  ;;  %v21_v45 = vld [vmem:[%s2371_s0 + $0x30] sm:$0xff] }
  0x19   :  { %1285 = vmatpush.msra.mxu3 %v211_v26  ;;  %657 = vmatpush.msra.mxu1 %v1483_v27  ;;  %v159_v42 = vld [vmem:[%s2371_s0 + $0x480] sm:$0xff]  ;;  %v162_v46 = vld [vmem:[%s2371_s0 + $0x498] sm:$0xff]  ;;  %v24_v49 = vld [vmem:[%s2371_s0 + $0x48] sm:$0xff] }
  0x1a   :  { %449 = vmatpush.msra.mxu0 %v210_v28  ;;  %v19_v43 = vld [vmem:[%s2371_s0 + $0x20] sm:$0xff]  ;;  %v22_v47 = vld [vmem:[%s2371_s0 + $0x38] sm:$0xff]  ;;  %v165_v50 = vld [vmem:[%s2371_s0 + $0x4b0] sm:$0xff] }
  0x1b   :  { %1286 = vmatpush.msra.mxu3 %v210_v28  ;;  %658 = vmatpush.msra.mxu1 %v1492_v29  ;;  %v35_v48 = vld [vmem:[%s2371_s0 + $0xa0] sm:$0xff]  ;;  %v25_v51 = vld [vmem:[%s2371_s0 + $0x50] sm:$0xff]  ;;  %v38_v52 = vld [vmem:[%s2371_s0 + $0xb8] sm:$0xff] }
  0x1c   :  { %1213 = vmatmul.msk.f32.gmra.mxu2 %vm244_vm0, %v26_v30  ;;  %450 = vmatpush.msra.mxu0 %v209_v31  ;;  %v27_v53 = vld [vmem:[%s2371_s0 + $0x60] sm:$0xff]  ;;  %v168_v54 = vld [vmem:[%s2371_s0 + $0x4c8] sm:$0xff]  ;;  %v41_v56 = vld [vmem:[%s2371_s0 + $0xd0] sm:$0xff] }
  0x1d   :  { %1287 = vmatpush.msra.mxu3 %v209_v31  ;;  %659 = vmatpush.msra.mxu1 %v225_v32  ;;  %v28_v55 = vld [vmem:[%s2371_s0 + $0x68] sm:$0xff]  ;;  %v30_v57 = vld [vmem:[%s2371_s0 + $0x78] sm:$0xff]  ;;  %v171_v58 = vld [vmem:[%s2371_s0 + $0x4e0] sm:$0xff] }
  0x1e   :  { %451 = vmatpush.msra.mxu0 %v208_v33  ;;  %v31_v59 = vld [vmem:[%s2371_s0 + $0x80] sm:$0xff]  ;;  %v44_v60 = vld [vmem:[%s2371_s0 + $0xe8] sm:$0xff]  ;;  %v33_v61 = vld [vmem:[%s2371_s0 + $0x90] sm:$0xff] }
  0x1f   :  { %1288 = vmatpush.msra.mxu3 %v208_v33  ;;  %660 = vmatpush.msra.mxu1 %v224_v34  ;;  %v174_v62 = vld [vmem:[%s2371_s0 + $0x4f8] sm:$0xff]  ;;  %v47_v0 = vld [vmem:[%s2371_s0 + $0x100] sm:$0xff]  ;;  %v177_v2 = vld [vmem:[%s2371_s0 + $0x510] sm:$0xff] }
  0x20   :  { %452 = vmatpush.msra.mxu0 %v207_v35  ;;  %v34_v63 = vld [vmem:[%s2371_s0 + $0x98] sm:$0xff]  ;;  %v37_v3 = vld [vmem:[%s2371_s0 + $0xb0] sm:$0xff]  ;;  %v39_v5 = vld [vmem:[%s2371_s0 + $0xc0] sm:$0xff] }
  0x21   :  { %1289 = vmatpush.msra.mxu3 %v207_v35  ;;  %453 = vmatmul.f32.vlgmr.msra.gmra.mxu0 %v15_v36  ;;  %v53_v8 = vld [vmem:[%s2371_s0 + $0x130] sm:$0xff]  ;;  %v183_v10 = vld [vmem:[%s2371_s0 + $0x540] sm:$0xff]  ;;  %v56_v12 = vld [vmem:[%s2371_s0 + $0x148] sm:$0xff] }
  0x22   :  { %594 = vmatmul.f32.vlgmr.msra.gmra.mxu3 %v156_v37  ;;  %661 = vmatpush.msra.mxu1 %v223_v38  ;;  %v45_v13 = vld [vmem:[%s2371_s0 + $0xf0] sm:$0xff]  ;;  %v46_v15 = vld [vmem:[%s2371_s0 + $0xf8] sm:$0xff]  ;;  %v48_v17 = vld [vmem:[%s2371_s0 + $0x108] sm:$0xff] }
  0x23   :  { %1290 = vmatpush.msrb.mxu3 %v1378_v4  ;;  %662 = vmatmul.f32.vlgmr.msra.gmra.mxu1 %v16_v39  ;;  %v50_v4 = vld [vmem:[%s2371_s0 + $0x118] sm:$0xff]  ;;  %v49_v19 = vld [vmem:[%s2371_s0 + $0x110] sm:$0xff]  ;;  %v51_v21 = vld [vmem:[%s2371_s0 + $0x120] sm:$0xff] }
  0x24   :  { %1214 = vmatmul.msk.f32.gmra.mxu2 %vm244_vm0, %v29_v40  ;;  %v192_v22 = vld [vmem:[%s2371_s0 + $0x588] sm:$0xff]  ;;  %v65_v24 = vld [vmem:[%s2371_s0 + $0x190] sm:$0xff]  ;;  %v55_v28 = vld [vmem:[%s2371_s0 + $0x140] sm:$0xff] }
  0x25   :  { %1291 = vmatpush.msrb.mxu3 %v1388_v6  ;;  %v180_v6 = vld [vmem:[%s2371_s0 + $0x528] sm:$0xff]  ;;  %v57_v30 = vld [vmem:[%s2371_s0 + $0x150] sm:$0xff]  ;;  %v58_v33 = vld [vmem:[%s2371_s0 + $0x158] sm:$0xff] }
  0x26   :  { %v60_v35 = vld [vmem:[%s2371_s0 + $0x168] sm:$0xff]  ;;  %v201_v37 = vld [vmem:[%s2371_s0 + $0x5d0] sm:$0xff]  ;;  %v74_v39 = vld [vmem:[%s2371_s0 + $0x1d8] sm:$0xff] }
  0x27   :  { %1292 = vmatpush.msrb.mxu3 %v1394_v7  ;;  %v40_v7 = vld [vmem:[%s2371_s0 + $0xc8] sm:$0xff]  ;;  %v1742_v40 = vld [vmem:[%s2373_s2] ss:$0 sm:$0xff] }
  0x29   :  { %456 = vmatmul.f32.gmra.mxu0 %v18_v41  ;;  %1293 = vmatpush.msrb.mxu3 %v1403_v9  ;;  %v42_v9 = vld [vmem:[%s2371_s0 + $0xd8] sm:$0xff] }
  0x2a   :  { %597 = vmatmul.f32.gmra.mxu3 %v159_v42  ;;  %v63_v42 = vld [vmem:[%s2371_s0 + $0x180] sm:$0xff] }
  0x2b   :  { %665 = vmatmul.f32.gmra.mxu1 %v19_v43  ;;  %1294 = vmatpush.msrb.mxu3 %v1412_v11  ;;  %v43_v11 = vld [vmem:[%s2371_s0 + $0xe0] sm:$0xff] }
  0x2c   :  { %1215 = vmatmul.msk.f32.gmra.mxu2 %vm244_vm0, %v32_v44 }
  0x2d   :  { %1295 = vmatpush.msrb.mxu3 %v1424_v14  ;;  %v186_v14 = vld [vmem:[%s2371_s0 + $0x558] sm:$0xff] }
  0x2f   :  { %1296 = vmatpush.msrb.mxu3 %v1434_v16  ;;  %v59_v16 = vld [vmem:[%s2371_s0 + $0x160] sm:$0xff] }
  0x31   :  { %459 = vmatmul.f32.gmra.mxu0 %v21_v45  ;;  %1297 = vmatpush.msrb.mxu3 %v1443_v18  ;;  %v189_v18 = vld [vmem:[%s2371_s0 + $0x570] sm:$0xff]  ;;  %v204_v45 = vld [vmem:[%s2371_s0 + $0x5e8] sm:$0xff] }
  0x32   :  { %600 = vmatmul.f32.gmra.mxu3 %v162_v46 }
  0x33   :  { %668 = vmatmul.f32.gmra.mxu1 %v22_v47  ;;  %1298 = vmatpush.msrb.mxu3 %v1452_v20  ;;  %v62_v20 = vld [vmem:[%s2371_s0 + $0x178] sm:$0xff]  ;;  %v64_v47 = vld [vmem:[%s2371_s0 + $0x188] sm:$0xff] }
  0x34   :  { %1216 = vmatmul.msk.f32.gmra.mxu2 %vm244_vm0, %v35_v48 }
  0x35   :  { %1299 = vmatpush.msrb.mxu3 %v1464_v23  ;;  %v52_v23 = vld [vmem:[%s2371_s0 + $0x128] sm:$0xff] }
  0x37   :  { %1300 = vmatpush.msrb.mxu3 %v1474_v25  ;;  %v54_v25 = vld [vmem:[%s2371_s0 + $0x138] sm:$0xff] }
  0x39   :  { %462 = vmatmul.f32.gmra.mxu0 %v24_v49  ;;  %1301 = vmatpush.msrb.mxu3 %v1483_v27  ;;  %v195_v27 = vld [vmem:[%s2371_s0 + $0x5a0] sm:$0xff]  ;;  %v77_v49 = vld [vmem:[%s2371_s0 + $0x1f0] sm:$0xff] }
  0x3a   :  { %603 = vmatmul.f32.gmra.mxu3 %v165_v50 }
  0x3b   :  { %671 = vmatmul.f32.gmra.mxu1 %v25_v51  ;;  %1302 = vmatpush.msrb.mxu3 %v1492_v29  ;;  %v68_v29 = vld [vmem:[%s2371_s0 + $0x1a8] sm:$0xff] }
  0x3c   :  { %1217 = vmatmul.msk.f32.gmra.mxu2 %vm244_vm0, %v38_v52 }
  0x3d   :  { %1303 = vmatpush.msrb.mxu3 %v225_v32  ;;  %v198_v32 = vld [vmem:[%s2371_s0 + $0x5b8] sm:$0xff] }
  0x3f   :  { %1304 = vmatpush.msrb.mxu3 %v224_v34  ;;  %v71_v34 = vld [vmem:[%s2371_s0 + $0x1c0] sm:$0xff] }
  0x41   :  { %465 = vmatmul.f32.gmra.mxu0 %v27_v53  ;;  %1305 = vmatpush.msrb.mxu3 %v223_v38  ;;  %v61_v38 = vld [vmem:[%s2371_s0 + $0x170] sm:$0xff] }
  0x42   :  { %606 = vmatmul.f32.gmra.mxu3 %v168_v54  ;;  %v66_v54 = vld [vmem:[%s2371_s0 + $0x198] sm:$0xff] }
  0x43   :  { %674 = vmatmul.f32.gmra.mxu1 %v28_v55  ;;  %1306 = vmatpush.msra.mxu3 %v1367_v1  ;;  %v36_v1 = vld [vmem:[%s2371_s0 + $0xa8] sm:$0xff] }
  0x44   :  { %1218 = vmatmul.msk.f32.gmra.mxu2 %vm244_vm0, %v41_v56 }
  0x49   :  { %468 = vmatmul.f32.gmra.mxu0 %v30_v57  ;;  %v157_v57 = vld [vmem:[%s2371_s0 + $0x470] sm:$0xff] }
  0x4a   :  { %609 = vmatmul.f32.gmra.mxu3 %v171_v58 }
  0x4b   :  { %677 = vmatmul.f32.gmra.mxu1 %v31_v59  ;;  %v67_v59 = vld [vmem:[%s2371_s0 + $0x1a0] sm:$0xff] }
  0x4c   :  { %1219 = vmatmul.msk.f32.gmra.mxu2 %vm244_vm0, %v44_v60 }
  0x51   :  { %471 = vmatmul.f32.gmra.mxu0 %v33_v61  ;;  %v80_v61 = vld [vmem:[%s2371_s0 + $0x208] sm:$0xff] }
  0x52   :  { %612 = vmatmul.f32.gmra.mxu3 %v174_v62 }
  0x53   :  { %680 = vmatmul.f32.gmra.mxu1 %v34_v63 }
  0x54   :  { %1220 = vmatmul.msk.f32.gmra.mxu2 %vm244_vm0, %v47_v0 }
  0x59   :  { %474 = vmatmul.f32.gmra.mxu0 %v36_v1 }
  0x5a   :  { %615 = vmatmul.f32.gmra.mxu3 %v177_v2  ;;  %v69_v2 = vld [vmem:[%s2371_s0 + $0x1b0] sm:$0xff] }
  0x5b   :  { %683 = vmatmul.f32.gmra.mxu1 %v37_v3 }
  0x5c   :  { %1221 = vmatmul.msk.f32.gmra.mxu2 %vm244_vm0, %v50_v4 }
  0x61   :  { %477 = vmatmul.f32.gmra.mxu0 %v39_v5  ;;  %v160_v5 = vld [vmem:[%s2371_s0 + $0x488] sm:$0xff] }
  0x62   :  { %618 = vmatmul.f32.gmra.mxu3 %v180_v6 }
  0x63   :  { %686 = vmatmul.f32.gmra.mxu1 %v40_v7  ;;  %v70_v7 = vld [vmem:[%s2371_s0 + $0x1b8] sm:$0xff] }
  0x64   :  { %1222 = vmatmul.msk.f32.gmra.mxu2 %vm244_vm0, %v53_v8 }
  0x69   :  { %480 = vmatmul.f32.gmra.mxu0 %v42_v9  ;;  %v83_v9 = vld [vmem:[%s2371_s0 + $0x220] sm:$0xff] }
  0x6a   :  { %621 = vmatmul.f32.gmra.mxu3 %v183_v10 }
  0x6b   :  { %689 = vmatmul.f32.gmra.mxu1 %v43_v11 }
  0x6c   :  { %1223 = vmatmul.msk.f32.gmra.mxu2 %vm244_vm0, %v56_v12 }
  0x71   :  { %483 = vmatmul.f32.gmra.mxu0 %v45_v13 }
  0x72   :  { %624 = vmatmul.f32.gmra.mxu3 %v186_v14  ;;  %v72_v14 = vld [vmem:[%s2371_s0 + $0x1c8] sm:$0xff] }
  0x73   :  { %692 = vmatmul.f32.gmra.mxu1 %v46_v15 }
  0x74   :  { %1224 = vmatmul.msk.f32.gmra.mxu2 %vm244_vm0, %v59_v16 }
  0x79   :  { %486 = vmatmul.f32.gmra.mxu0 %v48_v17  ;;  %v163_v17 = vld [vmem:[%s2371_s0 + $0x4a0] sm:$0xff] }
  0x7a   :  { %627 = vmatmul.f32.gmra.mxu3 %v189_v18 }
  0x7b   :  { %695 = vmatmul.f32.gmra.mxu1 %v49_v19  ;;  %v73_v19 = vld [vmem:[%s2371_s0 + $0x1d0] sm:$0xff] }
  0x7c   :  { %1225 = vmatmul.msk.f32.gmra.mxu2 %vm244_vm0, %v62_v20 }
  0x81   :  { %489 = vmatmul.f32.gmra.mxu0 %v51_v21  ;;  %v86_v21 = vld [vmem:[%s2371_s0 + $0x238] sm:$0xff] }
  0x82   :  { %630 = vmatmul.f32.gmra.mxu3 %v192_v22 }
  0x83   :  { %698 = vmatmul.f32.gmra.mxu1 %v52_v23 }
  0x84   :  { %1226 = vmatmul.msk.f32.gmra.mxu2 %vm244_vm0, %v65_v24 }
  0x87   :  { %v872_v26 = vpop.f32.mrf.mxu2 }
  0x89   :  { %492 = vmatmul.f32.gmra.mxu0 %v54_v25 }
  0x8a   :  { %633 = vmatmul.f32.gmra.mxu3 %v195_v27 }
  0x8b   :  { %701 = vmatmul.f32.gmra.mxu1 %v55_v28 }
  0x8c   :  { %1227 = vmatmul.msk.f32.gmra.mxu2 %vm244_vm0, %v68_v29  ;;  %v166_v29 = vld [vmem:[%s2371_s0 + $0x4b8] sm:$0xff] }
  0x8f   :  { %v875_v31 = vpop.f32.mrf.mxu2 }
  0x91   :  { %495 = vmatmul.f32.gmra.mxu0 %v57_v30 }
  0x92   :  { %636 = vmatmul.f32.gmra.mxu3 %v198_v32 }
  0x93   :  { %704 = vmatmul.f32.gmra.mxu1 %v58_v33  ;;  %v89_v33 = vld [vmem:[%s2371_s0 + $0x250] sm:$0xff] }
  0x94   :  { %1228 = vmatmul.msk.f32.gmra.mxu2 %vm244_vm0, %v71_v34 }
  0x97   :  { %v878_v36 = vpop.f32.mrf.mxu2 }
  0x99   :  { %498 = vmatmul.f32.gmra.mxu0 %v60_v35 }
  0x9a   :  { %639 = vmatmul.f32.gmra.mxu3 %v201_v37 }
  0x9b   :  { %707 = vmatmul.f32.gmra.mxu1 %v61_v38  ;;  %v78_v38 = vld [vmem:[%s2371_s0 + $0x1f8] sm:$0xff] }
  0x9c   :  { %1229 = vmatmul.msk.f32.gmra.mxu2 %vm244_vm0, %v74_v39 }
  0x9e   :  { %v454_v41 = vpop.f32.mrf.mxu0 }
  0x9f   :  { %v455_v43 = vadd.f32 %v1742_v40, %v454_v41  ;;  %v881_v44 = vpop.f32.mrf.mxu2 }
  0xa0   :  { %v663_v46 = vpop.f32.mrf.mxu1 }
  0xa1   :  { %v664_v48 = vadd.f32 %v663_v46, %v455_v43  ;;  %501 = vmatmul.f32.gmra.mxu0 %v63_v42  ;;  %v169_v42 = vld [vmem:[%s2371_s0 + $0x4d0] sm:$0xff]  ;;  %v92_v46 = vld [vmem:[%s2371_s0 + $0x268] sm:$0xff] }
  0xa2   :  { %642 = vmatmul.f32.gmra.mxu3 %v204_v45 }
  0xa3   :  { %v873_v50 = vadd.f32 %v872_v26, %v664_v48  ;;  %710 = vmatmul.f32.gmra.mxu1 %v64_v47  ;;  %v75_v26 = vld [vmem:[%s2371_s0 + $0x1e0] sm:$0xff] }
  0xa4   :  { %1230 = vmatmul.msk.f32.gmra.mxu2 %vm244_vm0, %v77_v49 }
  0xa5   :  { %v1064_v51 = vmax.f32 %v873_v50, 0.0  ;;  %v1759_v52 = vpop.f32.mrf.mxu3 }
  0xa6   :  { %v457_v53 = vpop.f32.mrf.mxu0 }
  0xa7   :  { %1128 = vst [vmem:[#allocation2] sm:$0xff] %v1064_v51  ;;  %v458_v55 = vadd.f32 %v1742_v40, %v457_v53  ;;  %v884_v56 = vpop.f32.mrf.mxu2  ;;  %v81_v51 = vld [vmem:[%s2371_s0 + $0x210] sm:$0xff] }
  0xa8   :  { %v666_v58 = vpop.f32.mrf.mxu1 }
  0xa9   :  { %v667_v60 = vadd.f32 %v666_v58, %v458_v55  ;;  %504 = vmatmul.f32.gmra.mxu0 %v66_v54  ;;  %v172_v55 = vld [vmem:[%s2371_s0 + $0x4e8] sm:$0xff] }
  0xaa   :  { %803 = vmatmul.f32.vlgmr.msrb.gmra.mxu3 %v157_v57  ;;  %v82_v57 = vld [vmem:[%s2371_s0 + $0x218] sm:$0xff] }
  0xab   :  { %v876_v62 = vadd.f32 %v875_v31, %v667_v60  ;;  %713 = vmatmul.f32.gmra.mxu1 %v67_v59  ;;  %v76_v31 = vld [vmem:[%s2371_s0 + $0x1e8] sm:$0xff]  ;;  %v95_v59 = vld [vmem:[%s2371_s0 + $0x280] sm:$0xff] }
  0xac   :  { %1231 = vmatmul.msk.f32.gmra.mxu2 %vm244_vm0, %v80_v61 }
  0xad   :  { %v1065_v63 = vmax.f32 %v876_v62, 0.0  ;;  %v1775_v0 = vpop.f32.mrf.mxu3 }
  0xae   :  { %v460_v1 = vpop.f32.mrf.mxu0 }
  0xaf   :  { %1129 = vst [vmem:[#allocation2 + $0x8] sm:$0xff] %v1065_v63  ;;  %v461_v3 = vadd.f32 %v1742_v40, %v460_v1  ;;  %v887_v4 = vpop.f32.mrf.mxu2  ;;  %v84_v1 = vld [vmem:[%s2371_s0 + $0x228] sm:$0xff] }
  0xb0   :  { %v669_v6 = vpop.f32.mrf.mxu1 }
  0xb1   :  { %v670_v8 = vadd.f32 %v669_v6, %v461_v3  ;;  %507 = vmatmul.f32.gmra.mxu0 %v69_v2  ;;  %v85_v6 = vld [vmem:[%s2371_s0 + $0x230] sm:$0xff] }
  0xb2   :  { %806 = vmatmul.f32.gmra.mxu3 %v160_v5 }
  0xb3   :  { %v879_v10 = vadd.f32 %v878_v36, %v670_v8  ;;  %716 = vmatmul.f32.gmra.mxu1 %v70_v7  ;;  %v98_v8 = vld [vmem:[%s2371_s0 + $0x298] sm:$0xff] }
  0xb4   :  { %1232 = vmatmul.msk.f32.gmra.mxu2 %vm244_vm0, %v83_v9 }
  0xb5   :  { %v1066_v11 = vmax.f32 %v879_v10, 0.0  ;;  %v1791_v12 = vpop.f32.mrf.mxu3 }
  0xb6   :  { %v463_v13 = vpop.f32.mrf.mxu0 }
  0xb7   :  { %1130 = vst [vmem:[#allocation2 + $0x10] sm:$0xff] %v1066_v11  ;;  %v464_v15 = vadd.f32 %v1742_v40, %v463_v13  ;;  %v890_v16 = vpop.f32.mrf.mxu2 }
  0xb8   :  { %v672_v18 = vpop.f32.mrf.mxu1 }
  0xb9   :  { %v673_v20 = vadd.f32 %v672_v18, %v464_v15  ;;  %510 = vmatmul.f32.gmra.mxu0 %v72_v14  ;;  %v87_v14 = vld [vmem:[%s2371_s0 + $0x240] sm:$0xff] }
  0xba   :  { %809 = vmatmul.f32.gmra.mxu3 %v163_v17  ;;  %v178_v17 = vld [vmem:[%s2371_s0 + $0x518] sm:$0xff] }
  0xbb   :  { %v882_v22 = vadd.f32 %v881_v44, %v673_v20  ;;  %719 = vmatmul.f32.gmra.mxu1 %v73_v19  ;;  %v79_v44 = vld [vmem:[%s2371_s0 + $0x200] sm:$0xff]  ;;  %v88_v19 = vld [vmem:[%s2371_s0 + $0x248] sm:$0xff] }
  0xbc   :  { %1233 = vmatmul.msk.f32.gmra.mxu2 %vm244_vm0, %v86_v21  ;;  %v101_v21 = vld [vmem:[%s2371_s0 + $0x2b0] sm:$0xff] }
  0xbd   :  { %v1067_v23 = vmax.f32 %v882_v22, 0.0  ;;  %v1807_v24 = vpop.f32.mrf.mxu3 }
  0xbe   :  { %v466_v25 = vpop.f32.mrf.mxu0 }
  0xbf   :  { %1131 = vst [vmem:[#allocation2 + $0x18] sm:$0xff] %v1067_v23  ;;  %v467_v27 = vadd.f32 %v1742_v40, %v466_v25  ;;  %v893_v28 = vpop.f32.mrf.mxu2 }
  0xc0   :  { %v675_v30 = vpop.f32.mrf.mxu1 }
  0xc1   :  { %v676_v32 = vadd.f32 %v675_v30, %v467_v27  ;;  %513 = vmatmul.f32.gmra.mxu0 %v75_v26  ;;  %v90_v27 = vld [vmem:[%s2371_s0 + $0x258] sm:$0xff]  ;;  %v181_v30 = vld [vmem:[%s2371_s0 + $0x530] sm:$0xff] }
  0xc2   :  { %812 = vmatmul.f32.gmra.mxu3 %v166_v29 }
  0xc3   :  { %v885_v34 = vadd.f32 %v884_v56, %v676_v32  ;;  %722 = vmatmul.f32.gmra.mxu1 %v76_v31  ;;  %v91_v32 = vld [vmem:[%s2371_s0 + $0x260] sm:$0xff] }
  0xc4   :  { %1234 = vmatmul.msk.f32.gmra.mxu2 %vm244_vm0, %v89_v33 }
  0xc5   :  { %v1068_v35 = vmax.f32 %v885_v34, 0.0  ;;  %v1823_v36 = vpop.f32.mrf.mxu3  ;;  %v104_v34 = vld [vmem:[%s2371_s0 + $0x2c8] sm:$0xff] }
  0xc6   :  { %v469_v37 = vpop.f32.mrf.mxu0 }
  0xc7   :  { %1132 = vst [vmem:[#allocation2 + $0x20] sm:$0xff] %v1068_v35  ;;  %v470_v39 = vadd.f32 %v1742_v40, %v469_v37  ;;  %v896_v41 = vpop.f32.mrf.mxu2 }
  0xc8   :  { %v678_v43 = vpop.f32.mrf.mxu1 }
  0xc9   :  { %v679_v45 = vadd.f32 %v678_v43, %v470_v39  ;;  %516 = vmatmul.f32.gmra.mxu0 %v78_v38 }
  0xca   :  { %815 = vmatmul.f32.gmra.mxu3 %v169_v42 }
  0xcb   :  { %v888_v47 = vadd.f32 %v887_v4, %v679_v45  ;;  %725 = vmatmul.f32.gmra.mxu1 %v79_v44  ;;  %v175_v4 = vld [vmem:[%s2371_s0 + $0x500] sm:$0xff]  ;;  %v184_v44 = vld [vmem:[%s2371_s0 + $0x548] sm:$0xff] }
  0xcc   :  { %1235 = vmatmul.msk.f32.gmra.mxu2 %vm244_vm0, %v92_v46  ;;  %v94_v46 = vld [vmem:[%s2371_s0 + $0x278] sm:$0xff] }
  0xcd   :  { %v1069_v48 = vmax.f32 %v888_v47, 0.0  ;;  %v1839_v49 = vpop.f32.mrf.mxu3 }
  0xce   :  { %v472_v50 = vpop.f32.mrf.mxu0 }
  0xcf   :  { %1133 = vst [vmem:[#allocation2 + $0x28] sm:$0xff] %v1069_v48  ;;  %v473_v53 = vadd.f32 %v1742_v40, %v472_v50  ;;  %v899_v54 = vpop.f32.mrf.mxu2  ;;  %v107_v48 = vld [vmem:[%s2371_s0 + $0x2e0] sm:$0xff] }
  0xd0   :  { %v681_v56 = vpop.f32.mrf.mxu1 }
  0xd1   :  { %v682_v58 = vadd.f32 %v681_v56, %v473_v53  ;;  %519 = vmatmul.f32.gmra.mxu0 %v81_v51 }
  0xd2   :  { %818 = vmatmul.f32.gmra.mxu3 %v172_v55  ;;  %v96_v55 = vld [vmem:[%s2371_s0 + $0x288] sm:$0xff] }
  0xd3   :  { %v891_v60 = vadd.f32 %v890_v16, %v682_v58  ;;  %728 = vmatmul.f32.gmra.mxu1 %v82_v57  ;;  %v187_v58 = vld [vmem:[%s2371_s0 + $0x560] sm:$0xff] }
  0xd4   :  { %1236 = vmatmul.msk.f32.gmra.mxu2 %vm244_vm0, %v95_v59 }
  0xd5   :  { %v1070_v61 = vmax.f32 %v891_v60, 0.0  ;;  %v1855_v62 = vpop.f32.mrf.mxu3  ;;  %v97_v60 = vld [vmem:[%s2371_s0 + $0x290] sm:$0xff] }
  0xd6   :  { %v475_v63 = vpop.f32.mrf.mxu0 }
  0xd7   :  { %1134 = vst [vmem:[#allocation2 + $0x30] sm:$0xff] %v1070_v61  ;;  %v476_v2 = vadd.f32 %v1742_v40, %v475_v63  ;;  %v902_v3 = vpop.f32.mrf.mxu2  ;;  %v110_v63 = vld [vmem:[%s2371_s0 + $0x2f8] sm:$0xff] }
  0xd8   :  { %v684_v5 = vpop.f32.mrf.mxu1 }
  0xd9   :  { %v685_v7 = vadd.f32 %v684_v5, %v476_v2  ;;  %522 = vmatmul.f32.gmra.mxu0 %v84_v1  ;;  %v99_v5 = vld [vmem:[%s2371_s0 + $0x2a0] sm:$0xff] }
  0xda   :  { %821 = vmatmul.f32.gmra.mxu3 %v175_v4 }
  0xdb   :  { %v894_v9 = vadd.f32 %v893_v28, %v685_v7  ;;  %731 = vmatmul.f32.gmra.mxu1 %v85_v6 }
  0xdc   :  { %1237 = vmatmul.msk.f32.gmra.mxu2 %vm244_vm0, %v98_v8  ;;  %v190_v8 = vld [vmem:[%s2371_s0 + $0x578] sm:$0xff] }
  0xdd   :  { %v1071_v10 = vmax.f32 %v894_v9, 0.0  ;;  %v1871_v11 = vpop.f32.mrf.mxu3 }
  0xde   :  { %v478_v13 = vpop.f32.mrf.mxu0 }
  0xdf   :  { %1135 = vst [vmem:[#allocation2 + $0x38] sm:$0xff] %v1071_v10  ;;  %v479_v15 = vadd.f32 %v1742_v40, %v478_v13  ;;  %v905_v16 = vpop.f32.mrf.mxu2  ;;  %v100_v10 = vld [vmem:[%s2371_s0 + $0x2a8] sm:$0xff] }
  0xe0   :  { %v687_v18 = vpop.f32.mrf.mxu1 }
  0xe1   :  { %v688_v20 = vadd.f32 %v687_v18, %v479_v15  ;;  %525 = vmatmul.f32.gmra.mxu0 %v87_v14  ;;  %v113_v14 = vld [vmem:[%s2371_s0 + $0x310] sm:$0xff] }
  0xe2   :  { %824 = vmatmul.f32.gmra.mxu3 %v178_v17 }
  0xe3   :  { %v897_v22 = vadd.f32 %v896_v41, %v688_v20  ;;  %734 = vmatmul.f32.gmra.mxu1 %v88_v19  ;;  %v93_v41 = vld [vmem:[%s2371_s0 + $0x270] sm:$0xff]  ;;  %v102_v19 = vld [vmem:[%s2371_s0 + $0x2b8] sm:$0xff] }
  0xe4   :  { %1238 = vmatmul.msk.f32.gmra.mxu2 %vm244_vm0, %v101_v21 }
  0xe5   :  { %v1072_v23 = vmax.f32 %v897_v22, 0.0  ;;  %v1887_v25 = vpop.f32.mrf.mxu3  ;;  %v193_v22 = vld [vmem:[%s2371_s0 + $0x590] sm:$0xff] }
  0xe6   :  { %v481_v26 = vpop.f32.mrf.mxu0 }
  0xe7   :  { %1136 = vst [vmem:[#allocation2 + $0x40] sm:$0xff] %v1072_v23  ;;  %v482_v28 = vadd.f32 %v1742_v40, %v481_v26  ;;  %v908_v29 = vpop.f32.mrf.mxu2  ;;  %v103_v26 = vld [vmem:[%s2371_s0 + $0x2c0] sm:$0xff] }
  0xe8   :  { %v690_v31 = vpop.f32.mrf.mxu1 }
  0xe9   :  { %v691_v33 = vadd.f32 %v690_v31, %v482_v28  ;;  %528 = vmatmul.f32.gmra.mxu0 %v90_v27  ;;  %v116_v28 = vld [vmem:[%s2371_s0 + $0x328] sm:$0xff] }
  0xea   :  { %827 = vmatmul.f32.gmra.mxu3 %v181_v30 }
  0xeb   :  { %v900_v35 = vadd.f32 %v899_v54, %v691_v33  ;;  %737 = vmatmul.f32.gmra.mxu1 %v91_v32  ;;  %v105_v33 = vld [vmem:[%s2371_s0 + $0x2d0] sm:$0xff] }
  0xec   :  { %1239 = vmatmul.msk.f32.gmra.mxu2 %vm244_vm0, %v104_v34 }
  0xed   :  { %v1073_v37 = vmax.f32 %v900_v35, 0.0  ;;  %v1903_v38 = vpop.f32.mrf.mxu3 }
  0xee   :  { %v484_v39 = vpop.f32.mrf.mxu0 }
  0xef   :  { %1137 = vst [vmem:[#allocation2 + $0x48] sm:$0xff] %v1073_v37  ;;  %v485_v42 = vadd.f32 %v1742_v40, %v484_v39  ;;  %v911_v43 = vpop.f32.mrf.mxu2  ;;  %v196_v37 = vld [vmem:[%s2371_s0 + $0x5a8] sm:$0xff] }
  0xf0   :  { %v693_v45 = vpop.f32.mrf.mxu1 }
  0xf1   :  { %v694_v47 = vadd.f32 %v693_v45, %v485_v42  ;;  %531 = vmatmul.f32.gmra.mxu0 %v93_v41  ;;  %v106_v41 = vld [vmem:[%s2371_s0 + $0x2d8] sm:$0xff] }
  0xf2   :  { %830 = vmatmul.f32.gmra.mxu3 %v184_v44 }
  0xf3   :  { %v903_v50 = vadd.f32 %v902_v3, %v694_v47  ;;  %740 = vmatmul.f32.gmra.mxu1 %v94_v46 }
  0xf4   :  { %1240 = vmatmul.msk.f32.gmra.mxu2 %vm244_vm0, %v107_v48  ;;  %v108_v48 = vld [vmem:[%s2371_s0 + $0x2e8] sm:$0xff] }
  0xf5   :  { %v1074_v51 = vmax.f32 %v903_v50, 0.0  ;;  %v1919_v53 = vpop.f32.mrf.mxu3 }
  0xf6   :  { %v487_v54 = vpop.f32.mrf.mxu0 }
  0xf7   :  { %1138 = vst [vmem:[#allocation2 + $0x50] sm:$0xff] %v1074_v51  ;;  %v488_v56 = vadd.f32 %v1742_v40, %v487_v54  ;;  %v914_v57 = vpop.f32.mrf.mxu2  ;;  %v199_v54 = vld [vmem:[%s2371_s0 + $0x5c0] sm:$0xff] }
  0xf8   :  { %v696_v59 = vpop.f32.mrf.mxu1 }
  0xf9   :  { %v697_v61 = vadd.f32 %v696_v59, %v488_v56  ;;  %534 = vmatmul.f32.gmra.mxu0 %v96_v55  ;;  %v109_v56 = vld [vmem:[%s2371_s0 + $0x2f0] sm:$0xff] }
  0xfa   :  { %833 = vmatmul.f32.gmra.mxu3 %v187_v58  ;;  %v122_v58 = vld [vmem:[%s2371_s0 + $0x358] sm:$0xff] }
  0xfb   :  { %v906_v1 = vadd.f32 %v905_v16, %v697_v61  ;;  %743 = vmatmul.f32.gmra.mxu1 %v97_v60 }
  0xfc   :  { %1241 = vmatmul.msk.f32.gmra.mxu2 %vm244_vm0, %v110_v63 }
  0xfd   :  { %v1075_v2 = vmax.f32 %v906_v1, 0.0  ;;  %v1935_v3 = vpop.f32.mrf.mxu3  ;;  %v111_v1 = vld [vmem:[%s2371_s0 + $0x300] sm:$0xff] }
  0xfe   :  { %v490_v4 = vpop.f32.mrf.mxu0 }
  0xff   :  { %1139 = vst [vmem:[#allocation2 + $0x58] sm:$0xff] %v1075_v2  ;;  %v491_v6 = vadd.f32 %v1742_v40, %v490_v4  ;;  %v917_v7 = vpop.f32.mrf.mxu2 }
 0x100   :  { %v699_v9 = vpop.f32.mrf.mxu1 }
 0x101   :  { %v700_v13 = vadd.f32 %v699_v9, %v491_v6  ;;  %537 = vmatmul.f32.gmra.mxu0 %v99_v5  ;;  %v202_v5 = vld [vmem:[%s2371_s0 + $0x5d8] sm:$0xff]  ;;  %v125_v9 = vld [vmem:[%s2371_s0 + $0x370] sm:$0xff] }
 0x102   :  { %836 = vmatmul.f32.gmra.mxu3 %v190_v8 }
 0x103   :  { %v909_v15 = vadd.f32 %v908_v29, %v700_v13  ;;  %746 = vmatmul.f32.gmra.mxu1 %v100_v10 }
 0x104   :  { %1242 = vmatmul.msk.f32.gmra.mxu2 %vm244_vm0, %v113_v14 }
 0x105   :  { %v1076_v16 = vmax.f32 %v909_v15, 0.0  ;;  %v1951_v17 = vpop.f32.mrf.mxu3 }
 0x106   :  { %v493_v18 = vpop.f32.mrf.mxu0 }
 0x107   :  { %1140 = vst [vmem:[#allocation2 + $0x60] sm:$0xff] %v1076_v16  ;;  %v494_v20 = vadd.f32 %v1742_v40, %v493_v18  ;;  %v920_v21 = vpop.f32.mrf.mxu2  ;;  %v114_v16 = vld [vmem:[%s2371_s0 + $0x318] sm:$0xff] }
 0x108   :  { %v702_v23 = vpop.f32.mrf.mxu1 }
 0x109   :  { %v703_v27 = vadd.f32 %v702_v23, %v494_v20  ;;  %540 = vmatmul.f32.gmra.mxu0 %v102_v19  ;;  %v205_v20 = vld [vmem:[%s2371_s0 + $0x5f0] sm:$0xff] }
 0x10a   :  { %839 = vmatmul.f32.gmra.mxu3 %v193_v22  ;;  %v115_v22 = vld [vmem:[%s2371_s0 + $0x320] sm:$0xff] }
 0x10b   :  { %v912_v29 = vadd.f32 %v911_v43, %v703_v27  ;;  %749 = vmatmul.f32.gmra.mxu1 %v103_v26  ;;  %v119_v43 = vld [vmem:[%s2371_s0 + $0x340] sm:$0xff]  ;;  %v128_v26 = vld [vmem:[%s2371_s0 + $0x388] sm:$0xff] }
 0x10c   :  { %1243 = vmatmul.msk.f32.gmra.mxu2 %vm244_vm0, %v116_v28  ;;  %v596_v28 = vadd.f32 %v1742_v40, %v1759_v52  ;;  %v170_v52 = vld [vmem:[%s2371_s0 + $0x4d8] sm:$0xff] }
 0x10d   :  { %v1077_v30 = vmax.f32 %v912_v29, 0.0  ;;  %v1967_v31 = vpop.f32.mrf.mxu3 }
 0x10e   :  { %v496_v32 = vpop.f32.mrf.mxu0 }
 0x10f   :  { %1141 = vst [vmem:[#allocation2 + $0x68] sm:$0xff] %v1077_v30  ;;  %v497_v34 = vadd.f32 %v1742_v40, %v496_v32  ;;  %v923_v35 = vpop.f32.mrf.mxu2 }
 0x110   :  { %v705_v39 = vpop.f32.mrf.mxu1 }
 0x111   :  { %v706_v42 = vadd.f32 %v705_v39, %v497_v34  ;;  %543 = vmatmul.f32.gmra.mxu0 %v105_v33  ;;  %v117_v34 = vld [vmem:[%s2371_s0 + $0x330] sm:$0xff] }
 0x112   :  { %842 = vmatmul.f32.gmra.mxu3 %v196_v37 }
 0x113   :  { %v915_v44 = vadd.f32 %v914_v57, %v706_v42  ;;  %752 = vmatmul.f32.gmra.mxu1 %v106_v41  ;;  %v118_v41 = vld [vmem:[%s2371_s0 + $0x338] sm:$0xff] }
 0x114   :  { %1244 = vmatmul.msk.f32.gmra.mxu2 %vm244_vm0, %v119_v43  ;;  %v131_v43 = vld [vmem:[%s2371_s0 + $0x3a0] sm:$0xff] }
 0x115   :  { %v1078_v45 = vmax.f32 %v915_v44, 0.0  ;;  %v1983_v46 = vpop.f32.mrf.mxu3 }
 0x116   :  { %v499_v47 = vpop.f32.mrf.mxu0 }
 0x117   :  { %1142 = vst [vmem:[#allocation2 + $0x70] sm:$0xff] %v1078_v45  ;;  %v500_v50 = vadd.f32 %v1742_v40, %v499_v47  ;;  %v926_v51 = vpop.f32.mrf.mxu2  ;;  %v599_v45 = vadd.f32 %v1742_v40, %v1775_v0  ;;  %v173_v0 = vld [vmem:[%s2371_s0 + $0x4f0] sm:$0xff] }
 0x118   :  { %v708_v55 = vpop.f32.mrf.mxu1 }
 0x119   :  { %v709_v57 = vadd.f32 %v708_v55, %v500_v50  ;;  %546 = vmatmul.f32.gmra.mxu0 %v108_v48  ;;  %v120_v55 = vld [vmem:[%s2371_s0 + $0x348] sm:$0xff] }
 0x11a   :  { %845 = vmatmul.f32.gmra.mxu3 %v199_v54 }
 0x11b   :  { %v918_v59 = vadd.f32 %v917_v7, %v709_v57  ;;  %755 = vmatmul.f32.gmra.mxu1 %v109_v56  ;;  %v112_v7 = vld [vmem:[%s2371_s0 + $0x308] sm:$0xff] }
 0x11c   :  { %1245 = vmatmul.msk.f32.gmra.mxu2 %vm244_vm0, %v122_v58  ;;  %v121_v58 = vld [vmem:[%s2371_s0 + $0x350] sm:$0xff] }
 0x11d   :  { %v1079_v60 = vmax.f32 %v918_v59, 0.0  ;;  %v1999_v61 = vpop.f32.mrf.mxu3 }
 0x11e   :  { %v502_v63 = vpop.f32.mrf.mxu0 }
 0x11f   :  { %1143 = vst [vmem:[#allocation2 + $0x78] sm:$0xff] %v1079_v60  ;;  %v503_v2 = vadd.f32 %v1742_v40, %v502_v63  ;;  %v2005_v4 = vpop.f32.mrf.mxu2  ;;  %v134_v60 = vld [vmem:[%s2371_s0 + $0x3b8] sm:$0xff] }
 0x120   :  { %v711_v6 = vpop.f32.mrf.mxu1 }
 0x121   :  { %v712_v8 = vadd.f32 %v711_v6, %v503_v2  ;;  %549 = vmatmul.f32.gmra.mxu0 %v111_v1  ;;  %v602_v1 = vadd.f32 %v1742_v40, %v1791_v12  ;;  %v176_v12 = vld [vmem:[%s2371_s0 + $0x508] sm:$0xff] }
 0x122   :  { %848 = vmatmul.f32.gmra.mxu3 %v202_v5 }
 0x123   :  { %v921_v10 = vadd.f32 %v920_v21, %v712_v8  ;;  %758 = vmatmul.f32.gmra.mxu1 %v112_v7  ;;  %v123_v8 = vld [vmem:[%s2371_s0 + $0x360] sm:$0xff] }
 0x124   :  { %1246 = vmatmul.msk.f32.gmra.mxu2 %vm244_vm0, %v125_v9 }
 0x125   :  { %v1080_v13 = vmax.f32 %v921_v10, 0.0  ;;  %v2017_v14 = vpop.f32.mrf.mxu3 }
 0x126   :  { %v505_v15 = vpop.f32.mrf.mxu0 }
 0x127   :  { %1144 = vst [vmem:[#allocation2 + $0x80] sm:$0xff] %v1080_v13  ;;  %v506_v18 = vadd.f32 %v1742_v40, %v505_v15  ;;  %v2023_v19 = vpop.f32.mrf.mxu2  ;;  %v124_v13 = vld [vmem:[%s2371_s0 + $0x368] sm:$0xff] }
 0x128   :  { %v714_v21 = vpop.f32.mrf.mxu1 }
 0x129   :  { %v715_v23 = vadd.f32 %v714_v21, %v506_v18  ;;  %552 = vmatmul.f32.gmra.mxu0 %v114_v16  ;;  %v137_v16 = vld [vmem:[%s2371_s0 + $0x3d0] sm:$0xff] }
 0x12a   :  { %851 = vmatmul.f32.gmra.mxu3 %v205_v20  ;;  %v605_v20 = vadd.f32 %v1742_v40, %v1807_v24  ;;  %v179_v24 = vld [vmem:[%s2371_s0 + $0x520] sm:$0xff] }
 0x12b   :  { %v924_v27 = vadd.f32 %v923_v35, %v715_v23  ;;  %761 = vmatmul.f32.gmra.mxu1 %v115_v22 }
 0x12c   :  { %1247 = vmatmul.msk.f32.gmra.mxu2 %vm244_vm0, %v128_v26 }
 0x12d   :  { %v1081_v29 = vmax.f32 %v924_v27, 0.0  ;;  %v804_v30 = vpop.f32.mrf.mxu3  ;;  %v126_v27 = vld [vmem:[%s2371_s0 + $0x378] sm:$0xff] }
 0x12e   :  { %v2037_v32 = vadd.f32 %v804_v30, %v596_v28  ;;  %v508_v33 = vpop.f32.mrf.mxu0  ;;  %v127_v30 = vld [vmem:[%s2371_s0 + $0x380] sm:$0xff] }
 0x12f   :  { %1145 = vst [vmem:[#allocation2 + $0x88] sm:$0xff] %v1081_v29  ;;  %v509_v37 = vadd.f32 %v1742_v40, %v508_v33  ;;  %v2043_v39 = vpop.f32.mrf.mxu2 }
 0x130   :  { %v717_v35 = vpop.f32.mrf.mxu1 }
 0x131   :  { %v718_v42 = vadd.f32 %v717_v35, %v509_v37  ;;  %555 = vmatmul.f32.gmra.mxu0 %v117_v34  ;;  %v140_v34 = vld [vmem:[%s2371_s0 + $0x3e8] sm:$0xff] }
 0x132   :  { %1261 = vmatmul.msk.f32.vlgmr.msra.gmra.mxu3 %vm244_vm0, %v170_v52  ;;  %v608_v52 = vadd.f32 %v1742_v40, %v1823_v36  ;;  %v182_v36 = vld [vmem:[%s2371_s0 + $0x538] sm:$0xff] }
 0x133   :  { %v927_v44 = vadd.f32 %v926_v51, %v718_v42  ;;  %764 = vmatmul.f32.gmra.mxu1 %v118_v41 }
 0x134   :  { %1248 = vmatmul.msk.f32.gmra.mxu2 %vm244_vm0, %v131_v43 }
 0x135   :  { %v1082_v47 = vmax.f32 %v927_v44, 0.0  ;;  %v807_v48 = vpop.f32.mrf.mxu3  ;;  %v129_v44 = vld [vmem:[%s2371_s0 + $0x390] sm:$0xff] }
 0x136   :  { %v2058_v50 = vadd.f32 %v807_v48, %v599_v45  ;;  %v511_v54 = vpop.f32.mrf.mxu0  ;;  %v130_v48 = vld [vmem:[%s2371_s0 + $0x398] sm:$0xff] }
 0x137   :  { %1146 = vst [vmem:[#allocation2 + $0x90] sm:$0xff] %v1082_v47  ;;  %v512_v56 = vadd.f32 %v1742_v40, %v511_v54  ;;  %v2064_v57 = vpop.f32.mrf.mxu2 }
 0x138   :  { %v720_v51 = vpop.f32.mrf.mxu1 }
 0x139   :  { %v721_v59 = vadd.f32 %v720_v51, %v512_v56  ;;  %558 = vmatmul.f32.gmra.mxu0 %v120_v55  ;;  %v143_v55 = vld [vmem:[%s2371_s0 + $0x400] sm:$0xff] }
 0x13a   :  { %1262 = vmatmul.msk.f32.gmra.mxu3 %vm244_vm0, %v173_v0  ;;  %v611_v0 = vadd.f32 %v1742_v40, %v1839_v49  ;;  %v185_v49 = vld [vmem:[%s2371_s0 + $0x550] sm:$0xff] }
 0x13b   :  { %v930_v63 = vadd.f32 %v2005_v4, %v721_v59  ;;  %767 = vmatmul.f32.gmra.mxu1 %v121_v58 }
 0x13c   :  { %1249 = vmatmul.msk.f32.gmra.mxu2 %vm244_vm0, %v134_v60 }
 0x13d   :  { %v1083_v2 = vmax.f32 %v930_v63, 0.0  ;;  %v810_v5 = vpop.f32.mrf.mxu3  ;;  %v132_v63 = vld [vmem:[%s2371_s0 + $0x3a8] sm:$0xff] }
 0x13e   :  { %v2080_v6 = vadd.f32 %v810_v5, %v602_v1  ;;  %v514_v7 = vpop.f32.mrf.mxu0  ;;  %v133_v5 = vld [vmem:[%s2371_s0 + $0x3b0] sm:$0xff] }
 0x13f   :  { %1147 = vst [vmem:[#allocation2 + $0x98] sm:$0xff] %v1083_v2  ;;  %v515_v9 = vadd.f32 %v1742_v40, %v514_v7  ;;  %v2086_v10 = vpop.f32.mrf.mxu2 }
 0x140   :  { %v723_v4 = vpop.f32.mrf.mxu1 }
 0x141   :  { %v724_v15 = vadd.f32 %v723_v4, %v515_v9  ;;  %561 = vmatmul.f32.gmra.mxu0 %v123_v8  ;;  %v146_v8 = vld [vmem:[%s2371_s0 + $0x418] sm:$0xff] }
 0x142   :  { %1263 = vmatmul.msk.f32.gmra.mxu3 %vm244_vm0, %v176_v12  ;;  %v614_v12 = vadd.f32 %v1742_v40, %v1855_v62  ;;  %v188_v62 = vld [vmem:[%s2371_s0 + $0x568] sm:$0xff] }
 0x143   :  { %v933_v18 = vadd.f32 %v2023_v19, %v724_v15  ;;  %770 = vmatmul.f32.gmra.mxu1 %v124_v13 }
 0x144   :  { %1250 = vmatmul.msk.f32.gmra.mxu2 %vm244_vm0, %v137_v16 }
 0x145   :  { %v1084_v21 = vmax.f32 %v933_v18, 0.0  ;;  %v813_v22 = vpop.f32.mrf.mxu3  ;;  %v135_v18 = vld [vmem:[%s2371_s0 + $0x3c0] sm:$0xff] }
 0x146   :  { %v2102_v23 = vadd.f32 %v813_v22, %v605_v20  ;;  %v517_v26 = vpop.f32.mrf.mxu0  ;;  %v136_v22 = vld [vmem:[%s2371_s0 + $0x3c8] sm:$0xff] }
 0x147   :  { %1148 = vst [vmem:[#allocation2 + $0xa0] sm:$0xff] %v1084_v21  ;;  %v518_v28 = vadd.f32 %v1742_v40, %v517_v26  ;;  %v2108_v29 = vpop.f32.mrf.mxu2 }
 0x148   :  { %v726_v19 = vpop.f32.mrf.mxu1 }
 0x149   :  { %v727_v33 = vadd.f32 %v726_v19, %v518_v28  ;;  %564 = vmatmul.f32.gmra.mxu0 %v126_v27  ;;  %v149_v27 = vld [vmem:[%s2371_s0 + $0x430] sm:$0xff] }
 0x14a   :  { %1264 = vmatmul.msk.f32.gmra.mxu3 %vm244_vm0, %v179_v24  ;;  %v617_v24 = vadd.f32 %v1742_v40, %v1871_v11  ;;  %v191_v11 = vld [vmem:[%s2371_s0 + $0x580] sm:$0xff] }
 0x14b   :  { %v936_v37 = vadd.f32 %v2043_v39, %v727_v33  ;;  %773 = vmatmul.f32.gmra.mxu1 %v127_v30 }
 0x14c   :  { %1251 = vmatmul.msk.f32.gmra.mxu2 %vm244_vm0, %v140_v34 }
 0x14d   :  { %v1085_v35 = vmax.f32 %v936_v37, 0.0  ;;  %v816_v41 = vpop.f32.mrf.mxu3  ;;  %v138_v37 = vld [vmem:[%s2371_s0 + $0x3d8] sm:$0xff] }
 0x14e   :  { %v2124_v42 = vadd.f32 %v816_v41, %v608_v52  ;;  %v520_v43 = vpop.f32.mrf.mxu0  ;;  %v139_v41 = vld [vmem:[%s2371_s0 + $0x3e0] sm:$0xff] }
 0x14f   :  { %1149 = vst [vmem:[#allocation2 + $0xa8] sm:$0xff] %v1085_v35  ;;  %v521_v45 = vadd.f32 %v1742_v40, %v520_v43  ;;  %v2130_v47 = vpop.f32.mrf.mxu2 }
 0x150   :  { %v729_v39 = vpop.f32.mrf.mxu1 }
 0x151   :  { %v730_v54 = vadd.f32 %v729_v39, %v521_v45  ;;  %567 = vmatmul.f32.gmra.mxu0 %v129_v44  ;;  %v152_v44 = vld [vmem:[%s2371_s0 + $0x448] sm:$0xff] }
 0x152   :  { %1265 = vmatmul.msk.f32.gmra.mxu3 %vm244_vm0, %v182_v36  ;;  %v620_v36 = vadd.f32 %v1742_v40, %v1887_v25  ;;  %v194_v25 = vld [vmem:[%s2371_s0 + $0x598] sm:$0xff] }
 0x153   :  { %v939_v56 = vadd.f32 %v2064_v57, %v730_v54  ;;  %776 = vmatmul.f32.gmra.mxu1 %v130_v48 }
 0x154   :  { %1252 = vmatmul.msk.f32.gmra.mxu2 %vm244_vm0, %v143_v55 }
 0x155   :  { %v1086_v51 = vmax.f32 %v939_v56, 0.0  ;;  %v819_v58 = vpop.f32.mrf.mxu3  ;;  %v141_v56 = vld [vmem:[%s2371_s0 + $0x3f0] sm:$0xff] }
 0x156   :  { %v2146_v59 = vadd.f32 %v819_v58, %v611_v0  ;;  %v523_v60 = vpop.f32.mrf.mxu0  ;;  %v142_v58 = vld [vmem:[%s2371_s0 + $0x3f8] sm:$0xff] }
 0x157   :  { %1150 = vst [vmem:[#allocation2 + $0xb0] sm:$0xff] %v1086_v51  ;;  %v524_v1 = vadd.f32 %v1742_v40, %v523_v60  ;;  %v2152_v2 = vpop.f32.mrf.mxu2 }
 0x158   :  { %v732_v57 = vpop.f32.mrf.mxu1 }
 0x159   :  { %v733_v7 = vadd.f32 %v732_v57, %v524_v1  ;;  %570 = vmatmul.f32.gmra.mxu0 %v132_v63  ;;  %v155_v63 = vld [vmem:[%s2371_s0 + $0x460] sm:$0xff] }
 0x15a   :  { %1266 = vmatmul.msk.f32.gmra.mxu3 %vm244_vm0, %v185_v49  ;;  %v623_v49 = vadd.f32 %v1742_v40, %v1903_v38  ;;  %v197_v38 = vld [vmem:[%s2371_s0 + $0x5b0] sm:$0xff] }
 0x15b   :  { %v942_v9 = vadd.f32 %v2086_v10, %v733_v7  ;;  %779 = vmatmul.f32.gmra.mxu1 %v133_v5 }
 0x15c   :  { %1253 = vmatmul.msk.f32.gmra.mxu2 %vm244_vm0, %v146_v8 }
 0x15d   :  { %v1087_v4 = vmax.f32 %v942_v9, 0.0  ;;  %v822_v13 = vpop.f32.mrf.mxu3  ;;  %v144_v9 = vld [vmem:[%s2371_s0 + $0x408] sm:$0xff] }
 0x15e   :  { %v2168_v15 = vadd.f32 %v822_v13, %v614_v12  ;;  %v526_v16 = vpop.f32.mrf.mxu0  ;;  %v145_v13 = vld [vmem:[%s2371_s0 + $0x410] sm:$0xff] }
 0x15f   :  { %1151 = vst [vmem:[#allocation2 + $0xb8] sm:$0xff] %v1087_v4  ;;  %v527_v20 = vadd.f32 %v1742_v40, %v526_v16  ;;  %v2174_v21 = vpop.f32.mrf.mxu2 }
 0x160   :  { %v735_v10 = vpop.f32.mrf.mxu1 }
 0x161   :  { %v736_v26 = vadd.f32 %v735_v10, %v527_v20  ;;  %573 = vmatmul.f32.gmra.mxu0 %v135_v18  ;;  %v158_v18 = vld [vmem:[%s2371_s0 + $0x478] sm:$0xff] }
 0x162   :  { %1267 = vmatmul.msk.f32.gmra.mxu3 %vm244_vm0, %v188_v62  ;;  %v626_v62 = vadd.f32 %v1742_v40, %v1919_v53 }
 0x163   :  { %v945_v28 = vadd.f32 %v2108_v29, %v736_v26  ;;  %782 = vmatmul.f32.gmra.mxu1 %v136_v22 }
 0x164   :  { %1254 = vmatmul.msk.f32.gmra.mxu2 %vm244_vm0, %v149_v27 }
 0x165   :  { %v1088_v19 = vmax.f32 %v945_v28, 0.0  ;;  %v825_v30 = vpop.f32.mrf.mxu3  ;;  %v147_v28 = vld [vmem:[%s2371_s0 + $0x420] sm:$0xff] }
 0x166   :  { %v2190_v33 = vadd.f32 %v825_v30, %v617_v24  ;;  %v529_v34 = vpop.f32.mrf.mxu0  ;;  %v148_v30 = vld [vmem:[%s2371_s0 + $0x428] sm:$0xff] }
 0x167   :  { %1152 = vst [vmem:[#allocation2 + $0xc0] sm:$0xff] %v1088_v19  ;;  %v530_v52 = vadd.f32 %v1742_v40, %v529_v34  ;;  %v2196_v35 = vpop.f32.mrf.mxu2 }
 0x168   :  { %v738_v29 = vpop.f32.mrf.mxu1 }
 0x169   :  { %v739_v43 = vadd.f32 %v738_v29, %v530_v52  ;;  %576 = vmatmul.f32.gmra.mxu0 %v138_v37  ;;  %v161_v37 = vld [vmem:[%s2371_s0 + $0x490] sm:$0xff]  ;;  %v2276_v52 = vld [vmem:[%s2373_s2] ss:$0 sm:$0xff] }
 0x16a   :  { %1268 = vmatmul.msk.f32.gmra.mxu3 %vm244_vm0, %v191_v11  ;;  %v629_v11 = vadd.f32 %v2276_v52, %v1935_v3 }
 0x16b   :  { %v948_v45 = vadd.f32 %v2130_v47, %v739_v43  ;;  %785 = vmatmul.f32.gmra.mxu1 %v139_v41 }
 0x16c   :  { %1255 = vmatmul.msk.f32.gmra.mxu2 %vm244_vm0, %v152_v44 }
 0x16d   :  { %v1089_v39 = vmax.f32 %v948_v45, 0.0  ;;  %v828_v48 = vpop.f32.mrf.mxu3 }
 0x16e   :  { %v2212_v54 = vadd.f32 %v828_v48, %v620_v36  ;;  %v532_v55 = vpop.f32.mrf.mxu0  ;;  %v151_v48 = vld [vmem:[%s2371_s0 + $0x440] sm:$0xff] }
 0x16f   :  { %1153 = vst [vmem:[#allocation2 + $0xc8] sm:$0xff] %v1089_v39  ;;  %v533_v0 = vadd.f32 %v1742_v40, %v532_v55  ;;  %v2218_v51 = vpop.f32.mrf.mxu2  ;;  %v203_v39 = vld [vmem:[%s2371_s0 + $0x5e0] sm:$0xff] }
 0x170   :  { %v741_v47 = vpop.f32.mrf.mxu1 }
 0x171   :  { %v742_v60 = vadd.f32 %v741_v47, %v533_v0  ;;  %579 = vmatmul.f32.gmra.mxu0 %v141_v56  ;;  %v164_v56 = vld [vmem:[%s2371_s0 + $0x4a8] sm:$0xff] }
 0x172   :  { %1269 = vmatmul.msk.f32.gmra.mxu3 %vm244_vm0, %v194_v25  ;;  %v632_v25 = vadd.f32 %v2276_v52, %v1951_v17 }
 0x173   :  { %v951_v1 = vadd.f32 %v2152_v2, %v742_v60  ;;  %788 = vmatmul.f32.gmra.mxu1 %v142_v58 }
 0x174   :  { %1256 = vmatmul.msk.f32.gmra.mxu2 %vm244_vm0, %v155_v63 }
 0x175   :  { %v1090_v57 = vmax.f32 %v951_v1, 0.0  ;;  %v831_v5 = vpop.f32.mrf.mxu3  ;;  %v153_v1 = vld [vmem:[%s2371_s0 + $0x450] sm:$0xff] }
 0x176   :  { %v2234_v7 = vadd.f32 %v831_v5, %v623_v49  ;;  %v535_v8 = vpop.f32.mrf.mxu0  ;;  %v154_v5 = vld [vmem:[%s2371_s0 + $0x458] sm:$0xff] }
 0x177   :  { %1154 = vst [vmem:[#allocation2 + $0xd0] sm:$0xff] %v1090_v57  ;;  %v536_v12 = vadd.f32 %v1742_v40, %v535_v8  ;;  %v2240_v4 = vpop.f32.mrf.mxu2 }
 0x178   :  { %v744_v2 = vpop.f32.mrf.mxu1 }
 0x179   :  { %v745_v16 = vadd.f32 %v744_v2, %v536_v12  ;;  %582 = vmatmul.f32.gmra.mxu0 %v144_v9  ;;  %v167_v9 = vld [vmem:[%s2371_s0 + $0x4c0] sm:$0xff] }
 0x17a   :  { %1270 = vmatmul.msk.f32.gmra.mxu3 %vm244_vm0, %v197_v38  ;;  %v635_v38 = vadd.f32 %v2276_v52, %v1967_v31 }
 0x17b   :  { %v954_v20 = vadd.f32 %v2174_v21, %v745_v16  ;;  %791 = vmatmul.f32.gmra.mxu1 %v145_v13  ;;  %v200_v21 = vld [vmem:[%s2371_s0 + $0x5c8] sm:$0xff] }
 0x17c   :  { %1257 = vmatmul.msk.f32.gmra.mxu2 %vm244_vm0, %v158_v18 }
 0x17d   :  { %v1091_v10 = vmax.f32 %v954_v20, 0.0  ;;  %v834_v22 = vpop.f32.mrf.mxu3 }
 0x17e   :  { %v2256_v26 = vadd.f32 %v834_v22, %v626_v62  ;;  %v538_v27 = vpop.f32.mrf.mxu0 }
 0x17f   :  { %1155 = vst [vmem:[#allocation2 + $0xd8] sm:$0xff] %v1091_v10  ;;  %v539_v24 = vadd.f32 %v1742_v40, %v538_v27  ;;  %v965_v19 = vpop.f32.mrf.mxu2 }
 0x180   :  { %v747_v53 = vpop.f32.mrf.mxu1 }
 0x181   :  { %v748_v34 = vadd.f32 %v747_v53, %v539_v24  ;;  %585 = vmatmul.f32.gmra.mxu0 %v147_v28 }
 0x182   :  { %1271 = vmatmul.msk.f32.gmra.mxu3 %vm244_vm0, %v200_v21 }
 0x183   :  { %v957_v40 = vadd.f32 %v2196_v35, %v748_v34  ;;  %794 = vmatmul.f32.gmra.mxu1 %v148_v30  ;;  %v150_v35 = vld [vmem:[%s2371_s0 + $0x438] sm:$0xff] }
 0x184   :  { %1258 = vmatmul.msk.f32.gmra.mxu2 %vm244_vm0, %v161_v37 }
 0x185   :  { %v1092_v29 = vmax.f32 %v957_v40, 0.0  ;;  %v837_v41 = vpop.f32.mrf.mxu3 }
 0x186   :  { %v2281_v43 = vadd.f32 %v837_v41, %v629_v11  ;;  %v541_v44 = vpop.f32.mrf.mxu0  ;;  %v641_v11 = vadd.f32 %v2276_v52, %v1999_v61 }
 0x187   :  { %1156 = vst [vmem:[#allocation2 + $0xe0] sm:$0xff] %v1092_v29  ;;  %v542_v45 = vadd.f32 %v2276_v52, %v541_v44  ;;  %v968_v36 = vpop.f32.mrf.mxu2 }
 0x188   :  { %v750_v3 = vpop.f32.mrf.mxu1 }
 0x189   :  { %v751_v55 = vadd.f32 %v750_v3, %v542_v45  ;;  %588 = vmatmul.f32.gmra.mxu0 %v150_v35 }
 0x18a   :  { %1272 = vmatmul.msk.f32.gmra.mxu3 %vm244_vm0, %v203_v39 }
 0x18b   :  { %v960_v0 = vadd.f32 %v2218_v51, %v751_v55  ;;  %797 = vmatmul.f32.gmra.mxu1 %v151_v48  ;;  %v206_v51 = vld [vmem:[%s2371_s0 + $0x5f8] sm:$0xff]  ;;  %v644_v48 = vadd.f32 %v2276_v52, %v2017_v14  ;;  %s1338_s0 = smov [#allocation2]  }
 0x18c   :  { %1259 = vmatmul.msk.f32.gmra.mxu2 %vm244_vm0, %v164_v56  ;;  %s1196_s19 = sshll.u32 %s1338_s0, 4  ;;  %s1197_s19 = int_to_ptr.vmem [resolvable:$true] %s1196_s19 }
 0x18d   :  { %v1093_v47 = vmax.f32 %v960_v0, 0.0  ;;  %v840_v58 = vpop.f32.mrf.mxu3 }
 0x18e   :  { %v2301_v60 = vadd.f32 %v840_v58, %v632_v25  ;;  %v544_v63 = vpop.f32.mrf.mxu0 }
 0x18f   :  { %1157 = vst [vmem:[#allocation2 + $0xe8] sm:$0xff] %v1093_v47  ;;  %v545_v49 = vadd.f32 %v2276_v52, %v544_v63  ;;  %v971_v57 = vpop.f32.mrf.mxu2 }
 0x190   :  { %v753_v17 = vpop.f32.mrf.mxu1 }
 0x191   :  { %v754_v8 = vadd.f32 %v753_v17, %v545_v49  ;;  %591 = vmatmul.f32.gmra.mxu0 %v153_v1 }
 0x192   :  { %1273 = vmatmul.msk.f32.gmra.mxu3 %vm244_vm0, %v206_v51 }
 0x193   :  { %v963_v12 = vadd.f32 %v2240_v4, %v754_v8  ;;  %800 = vmatmul.f32.gmra.mxu1 %v154_v5  ;;  %v638_v4 = vadd.f32 %v2276_v52, %v1983_v46 }
 0x194   :  { %1260 = vmatmul.msk.f32.gmra.mxu2 %vm244_vm0, %v167_v9 }
 0x195   :  { %v1094_v2 = vmax.f32 %v963_v12, 0.0  ;;  %v843_v13 = vpop.f32.mrf.mxu3 }
 0x196   :  { %v2321_v16 = vadd.f32 %v843_v13, %v635_v38  ;;  %v547_v18 = vpop.f32.mrf.mxu0 }
 0x197   :  { %1158 = vst [vmem:[#allocation2 + $0xf0] sm:$0xff] %v1094_v2  ;;  %v548_v20 = vadd.f32 %v2276_v52, %v547_v18  ;;  %v974_v62 = vpop.f32.mrf.mxu2 }
 0x198   :  { %v756_v10 = vpop.f32.mrf.mxu1 }
 0x199   :  { %v757_v22 = vadd.f32 %v756_v10, %v548_v20 }
 0x19b   :  { %v966_v27 = vadd.f32 %v965_v19, %v757_v22 }
 0x19d   :  { %v1095_v28 = vmax.f32 %v966_v27, 0.0  ;;  %v846_v24 = vpop.f32.mrf.mxu3 }
 0x19e   :  { %v2326_v31 = vadd.f32 %v846_v24, %v638_v4  ;;  %v550_v21 = vpop.f32.mrf.mxu0 }
 0x19f   :  { %1159 = vst [vmem:[#allocation2 + $0xf8] sm:$0xff] %v1095_v28  ;;  %v551_v53 = vadd.f32 %v2276_v52, %v550_v21  ;;  %v977_v30 = vpop.f32.mrf.mxu2 }
 0x1a0   :  { %v759_v34 = vpop.f32.mrf.mxu1 }
 0x1a1   :  { %v760_v37 = vadd.f32 %v759_v34, %v551_v53 }
 0x1a3   :  { %v969_v40 = vadd.f32 %v968_v36, %v760_v37 }
 0x1a5   :  { %v1096_v29 = vmax.f32 %v969_v40, 0.0  ;;  %v849_v19 = vpop.f32.mrf.mxu3 }
 0x1a6   :  { %v2331_v41 = vadd.f32 %v849_v19, %v641_v11  ;;  %v553_v46 = vpop.f32.mrf.mxu0 }
 0x1a7   :  { %1160 = vst [vmem:[#allocation2 + $0x100] sm:$0xff] %v1096_v29  ;;  %v554_v44 = vadd.f32 %v2276_v52, %v553_v46  ;;  %v980_v35 = vpop.f32.mrf.mxu2 }
 0x1a8   :  { %v762_v45 = vpop.f32.mrf.mxu1 }
 0x1a9   :  { %v763_v39 = vadd.f32 %v762_v45, %v554_v44 }
 0x1ab   :  { %v972_v3 = vadd.f32 %v971_v57, %v763_v39 }
 0x1ad   :  { %v1097_v55 = vmax.f32 %v972_v3, 0.0  ;;  %v852_v36 = vpop.f32.mrf.mxu3 }
 0x1ae   :  { %v2336_v56 = vadd.f32 %v852_v36, %v644_v48  ;;  %v556_v61 = vpop.f32.mrf.mxu0 }
 0x1af   :  { %1161 = vst [vmem:[#allocation2 + $0x108] sm:$0xff] %v1097_v55  ;;  %v557_v0 = vadd.f32 %v2276_v52, %v556_v61  ;;  %v983_v25 = vpop.f32.mrf.mxu2 }
 0x1b0   :  { %v765_v47 = vpop.f32.mrf.mxu1 }
 0x1b1   :  { %v766_v58 = vadd.f32 %v765_v47, %v557_v0 }
 0x1b3   :  { %v975_v63 = vadd.f32 %v974_v62, %v766_v58 }
 0x1b5   :  { %v1098_v1 = vmax.f32 %v975_v63, 0.0  ;;  %v1025_v49 = vpop.f32.mrf.mxu3 }
 0x1b6   :  { %v1026_v51 = vadd.f32 %v1025_v49, %v2124_v42  ;;  %v559_v57 = vpop.f32.mrf.mxu0 }
 0x1b7   :  { %1162 = vst [vmem:[#allocation2 + $0x110] sm:$0xff] %v1098_v1  ;;  %v560_v14 = vadd.f32 %v2276_v52, %v559_v57  ;;  %v986_v17 = vpop.f32.mrf.mxu2 }
 0x1b8   :  { %v1115_v5 = vmax.f32 %v1026_v51, 0.0  ;;  %v768_v8 = vpop.f32.mrf.mxu1 }
 0x1b9   :  { %v769_v9 = vadd.f32 %v768_v8, %v560_v14 }
 0x1ba   :  { %1179 = vst [vmem:[#allocation2 + $0x198] sm:$0xff] %v1115_v5 }
 0x1bb   :  { %v978_v12 = vadd.f32 %v977_v30, %v769_v9 }
 0x1bd   :  { %v1099_v38 = vmax.f32 %v978_v12, 0.0  ;;  %v1028_v2 = vpop.f32.mrf.mxu3 }
 0x1be   :  { %v1029_v13 = vadd.f32 %v1028_v2, %v2146_v59  ;;  %v562_v18 = vpop.f32.mrf.mxu0 }
 0x1bf   :  { %1163 = vst [vmem:[#allocation2 + $0x118] sm:$0xff] %v1099_v38  ;;  %v563_v20 = vadd.f32 %v2276_v52, %v562_v18  ;;  %v989_v62 = vpop.f32.mrf.mxu2 }
 0x1c0   :  { %v1116_v42 = vmax.f32 %v1029_v13, 0.0  ;;  %v771_v10 = vpop.f32.mrf.mxu1 }
 0x1c1   :  { %v772_v22 = vadd.f32 %v771_v10, %v563_v20 }
 0x1c2   :  { %1180 = vst [vmem:[#allocation2 + $0x1a0] sm:$0xff] %v1116_v42 }
 0x1c3   :  { %v981_v27 = vadd.f32 %v980_v35, %v772_v22 }
 0x1c5   :  { %v1100_v4 = vmax.f32 %v981_v27, 0.0  ;;  %v1031_v28 = vpop.f32.mrf.mxu3 }
 0x1c6   :  { %v1032_v24 = vadd.f32 %v1031_v28, %v2168_v15  ;;  %v565_v21 = vpop.f32.mrf.mxu0 }
 0x1c7   :  { %1164 = vst [vmem:[#allocation2 + $0x120] sm:$0xff] %v1100_v4  ;;  %v566_v53 = vadd.f32 %v2276_v52, %v565_v21  ;;  %v992_v30 = vpop.f32.mrf.mxu2 }
 0x1c8   :  { %v1117_v59 = vmax.f32 %v1032_v24, 0.0  ;;  %v774_v34 = vpop.f32.mrf.mxu1 }
 0x1c9   :  { %v775_v37 = vadd.f32 %v774_v34, %v566_v53 }
 0x1ca   :  { %1181 = vst [vmem:[#allocation2 + $0x1a8] sm:$0xff] %v1117_v59 }
 0x1cb   :  { %v984_v40 = vadd.f32 %v983_v25, %v775_v37 }
 0x1cd   :  { %v1101_v11 = vmax.f32 %v984_v40, 0.0  ;;  %v1034_v29 = vpop.f32.mrf.mxu3 }
 0x1ce   :  { %v1035_v19 = vadd.f32 %v1034_v29, %v2190_v33  ;;  %v568_v46 = vpop.f32.mrf.mxu0 }
 0x1cf   :  { %1165 = vst [vmem:[#allocation2 + $0x128] sm:$0xff] %v1101_v11  ;;  %v569_v44 = vadd.f32 %v2276_v52, %v568_v46  ;;  %v995_v35 = vpop.f32.mrf.mxu2 }
 0x1d0   :  { %v1118_v15 = vmax.f32 %v1035_v19, 0.0  ;;  %v777_v45 = vpop.f32.mrf.mxu1 }
 0x1d1   :  { %v778_v39 = vadd.f32 %v777_v45, %v569_v44 }
 0x1d2   :  { %1182 = vst [vmem:[#allocation2 + $0x1b0] sm:$0xff] %v1118_v15 }
 0x1d3   :  { %v987_v3 = vadd.f32 %v986_v17, %v778_v39 }
 0x1d5   :  { %v1102_v48 = vmax.f32 %v987_v3, 0.0  ;;  %v1037_v55 = vpop.f32.mrf.mxu3 }
 0x1d6   :  { %v1038_v36 = vadd.f32 %v1037_v55, %v2212_v54  ;;  %v571_v61 = vpop.f32.mrf.mxu0 }
 0x1d7   :  { %1166 = vst [vmem:[#allocation2 + $0x130] sm:$0xff] %v1102_v48  ;;  %v572_v0 = vadd.f32 %v2276_v52, %v571_v61  ;;  %v998_v25 = vpop.f32.mrf.mxu2 }
 0x1d8   :  { %v1119_v33 = vmax.f32 %v1038_v36, 0.0  ;;  %v780_v47 = vpop.f32.mrf.mxu1 }
 0x1d9   :  { %v781_v58 = vadd.f32 %v780_v47, %v572_v0 }
 0x1da   :  { %1183 = vst [vmem:[#allocation2 + $0x1b8] sm:$0xff] %v1119_v33 }
 0x1db   :  { %v990_v63 = vadd.f32 %v989_v62, %v781_v58 }
 0x1dd   :  { %v1103_v1 = vmax.f32 %v990_v63, 0.0  ;;  %v1040_v49 = vpop.f32.mrf.mxu3 }
 0x1de   :  { %v1041_v51 = vadd.f32 %v1040_v49, %v2234_v7  ;;  %v574_v57 = vpop.f32.mrf.mxu0 }
 0x1df   :  { %1167 = vst [vmem:[#allocation2 + $0x138] sm:$0xff] %v1103_v1  ;;  %v575_v14 = vadd.f32 %v2276_v52, %v574_v57  ;;  %v1001_v17 = vpop.f32.mrf.mxu2 }
 0x1e0   :  { %v1120_v54 = vmax.f32 %v1041_v51, 0.0  ;;  %v783_v5 = vpop.f32.mrf.mxu1 }
 0x1e1   :  { %v784_v8 = vadd.f32 %v783_v5, %v575_v14 }
 0x1e2   :  { %1184 = vst [vmem:[#allocation2 + $0x1c0] sm:$0xff] %v1120_v54 }
 0x1e3   :  { %v993_v9 = vadd.f32 %v992_v30, %v784_v8 }
 0x1e5   :  { %v1104_v12 = vmax.f32 %v993_v9, 0.0  ;;  %v1043_v38 = vpop.f32.mrf.mxu3 }
 0x1e6   :  { %v1044_v2 = vadd.f32 %v1043_v38, %v2256_v26  ;;  %v577_v13 = vpop.f32.mrf.mxu0 }
 0x1e7   :  { %1168 = vst [vmem:[#allocation2 + $0x140] sm:$0xff] %v1104_v12  ;;  %v578_v18 = vadd.f32 %v2276_v52, %v577_v13  ;;  %v1004_v20 = vpop.f32.mrf.mxu2 }
 0x1e8   :  { %v1121_v7 = vmax.f32 %v1044_v2, 0.0  ;;  %v786_v62 = vpop.f32.mrf.mxu1 }
 0x1e9   :  { %v787_v42 = vadd.f32 %v786_v62, %v578_v18 }
 0x1ea   :  { %1185 = vst [vmem:[#allocation2 + $0x1c8] sm:$0xff] %v1121_v7 }
 0x1eb   :  { %v996_v10 = vadd.f32 %v995_v35, %v787_v42 }
 0x1ed   :  { %v1105_v22 = vmax.f32 %v996_v10, 0.0  ;;  %v1046_v27 = vpop.f32.mrf.mxu3 }
 0x1ee   :  { %v1047_v4 = vadd.f32 %v1046_v27, %v2281_v43  ;;  %v580_v28 = vpop.f32.mrf.mxu0 }
 0x1ef   :  { %1169 = vst [vmem:[#allocation2 + $0x148] sm:$0xff] %v1105_v22  ;;  %v581_v24 = vadd.f32 %v2276_v52, %v580_v28  ;;  %v1007_v21 = vpop.f32.mrf.mxu2 }
 0x1f0   :  { %v1122_v26 = vmax.f32 %v1047_v4, 0.0  ;;  %v789_v53 = vpop.f32.mrf.mxu1 }
 0x1f1   :  { %v790_v30 = vadd.f32 %v789_v53, %v581_v24 }
 0x1f2   :  { %1186 = vst [vmem:[#allocation2 + $0x1d0] sm:$0xff] %v1122_v26 }
 0x1f3   :  { %v999_v59 = vadd.f32 %v998_v25, %v790_v30 }
 0x1f5   :  { %v1106_v34 = vmax.f32 %v999_v59, 0.0  ;;  %v1049_v37 = vpop.f32.mrf.mxu3 }
 0x1f6   :  { %v1050_v40 = vadd.f32 %v1049_v37, %v2301_v60  ;;  %v583_v11 = vpop.f32.mrf.mxu0 }
 0x1f7   :  { %1170 = vst [vmem:[#allocation2 + $0x150] sm:$0xff] %v1106_v34  ;;  %v584_v29 = vadd.f32 %v2276_v52, %v583_v11  ;;  %v1010_v19 = vpop.f32.mrf.mxu2 }
 0x1f8   :  { %v1123_v43 = vmax.f32 %v1050_v40, 0.0  ;;  %v792_v46 = vpop.f32.mrf.mxu1 }
 0x1f9   :  { %v793_v44 = vadd.f32 %v792_v46, %v584_v29 }
 0x1fa   :  { %1187 = vst [vmem:[#allocation2 + $0x1d8] sm:$0xff] %v1123_v43 }
 0x1fb   :  { %v1002_v35 = vadd.f32 %v1001_v17, %v793_v44 }
 0x1fd   :  { %v1107_v15 = vmax.f32 %v1002_v35, 0.0  ;;  %v1052_v45 = vpop.f32.mrf.mxu3 }
 0x1fe   :  { %v1053_v39 = vadd.f32 %v1052_v45, %v2321_v16  ;;  %v586_v3 = vpop.f32.mrf.mxu0 }
 0x1ff   :  { %1171 = vst [vmem:[#allocation2 + $0x158] sm:$0xff] %v1107_v15  ;;  %v587_v48 = vadd.f32 %v2276_v52, %v586_v3  ;;  %v1013_v55 = vpop.f32.mrf.mxu2 }
 0x200   :  { %v1124_v60 = vmax.f32 %v1053_v39, 0.0  ;;  %v1014_v36 = vadd.f32 %v1013_v55, %v2037_v32  ;;  %v795_v61 = vpop.f32.mrf.mxu1 }
 0x201   :  { %v796_v0 = vadd.f32 %v795_v61, %v587_v48 }
 0x202   :  { %1188 = vst [vmem:[#allocation2 + $0x1e0] sm:$0xff] %v1124_v60  ;;  %v1111_v25 = vmax.f32 %v1014_v36, 0.0 }
 0x203   :  { %v1005_v33 = vadd.f32 %v1004_v20, %v796_v0 }
 0x204   :  { %1175 = vst [vmem:[#allocation2 + $0x178] sm:$0xff] %v1111_v25 }
 0x205   :  { %v1108_v47 = vmax.f32 %v1005_v33, 0.0  ;;  %v1055_v58 = vpop.f32.mrf.mxu3 }
 0x206   :  { %v1056_v63 = vadd.f32 %v1055_v58, %v2326_v31  ;;  %v589_v1 = vpop.f32.mrf.mxu0 }
 0x207   :  { %1172 = vst [vmem:[#allocation2 + $0x160] sm:$0xff] %v1108_v47  ;;  %v590_v16 = vadd.f32 %v2276_v52, %v589_v1  ;;  %v1016_v49 = vpop.f32.mrf.mxu2 }
 0x208   :  { %v1125_v51 = vmax.f32 %v1056_v63, 0.0  ;;  %v1017_v57 = vadd.f32 %v1016_v49, %v2058_v50  ;;  %v798_v14 = vpop.f32.mrf.mxu1 }
 0x209   :  { %v799_v32 = vadd.f32 %v798_v14, %v590_v16 }
 0x20a   :  { %1189 = vst [vmem:[#allocation2 + $0x1e8] sm:$0xff] %v1125_v51  ;;  %v1112_v17 = vmax.f32 %v1017_v57, 0.0 }
 0x20b   :  { %v1008_v54 = vadd.f32 %v1007_v21, %v799_v32 }
 0x20c   :  { %1176 = vst [vmem:[#allocation2 + $0x180] sm:$0xff] %v1112_v17 }
 0x20d   :  { %v1109_v5 = vmax.f32 %v1008_v54, 0.0  ;;  %v1058_v8 = vpop.f32.mrf.mxu3 }
 0x20e   :  { %v1059_v9 = vadd.f32 %v1058_v8, %v2331_v41  ;;  %v592_v12 = vpop.f32.mrf.mxu0 }
 0x20f   :  { %1173 = vst [vmem:[#allocation2 + $0x168] sm:$0xff] %v1109_v5  ;;  %v593_v31 = vadd.f32 %v2276_v52, %v592_v12  ;;  %v1019_v38 = vpop.f32.mrf.mxu2 }
 0x210   :  { %v1126_v2 = vmax.f32 %v1059_v9, 0.0  ;;  %v1020_v13 = vadd.f32 %v1019_v38, %v2080_v6  ;;  %v801_v18 = vpop.f32.mrf.mxu1 }
 0x211   :  { %v802_v50 = vadd.f32 %v801_v18, %v593_v31 }
 0x212   :  { %1190 = vst [vmem:[#allocation2 + $0x1f0] sm:$0xff] %v1126_v2  ;;  %v1113_v20 = vmax.f32 %v1020_v13, 0.0 }
 0x213   :  { %v1011_v7 = vadd.f32 %v1010_v19, %v802_v50 }
 0x214   :  { %1177 = vst [vmem:[#allocation2 + $0x188] sm:$0xff] %v1113_v20 }
 0x215   :  { %v1110_v62 = vmax.f32 %v1011_v7, 0.0  ;;  %v1061_v42 = vpop.f32.mrf.mxu3 }
 0x216   :  { %v1062_v10 = vadd.f32 %v1061_v42, %v2336_v56 }
 0x217   :  { %1174 = vst [vmem:[#allocation2 + $0x170] sm:$0xff] %v1110_v62  ;;  %v1022_v52 = vpop.f32.mrf.mxu2 }
 0x218   :  { %v1127_v41 = vmax.f32 %v1062_v10, 0.0  ;;  %v1023_v6 = vadd.f32 %v1022_v52, %v2102_v23 }
 0x21a   :  { %1191 = vst [vmem:[#allocation2 + $0x1f8] sm:$0xff] %v1127_v41  ;;  %v1114_v22 = vmax.f32 %v1023_v6, 0.0 }
 0x21c   :  { %1178 = vst [vmem:[#allocation2 + $0x190] sm:$0xff] %v1114_v22 }
 0x21d   :  { %1204 = dma.vmem_to_hbm [thread:$0]  %s1197_s19, 8192, %s1199_s22, [#allocation3], %s1339_s23, %s1339_s23, %s1340_s24  }
 0x21e   :  { %1336 = dma.done.wait [#allocation3], 8192  }
 0x21f   :  { %1337 = vsyncadd [#allocation3], 4294959104 }
 0x220   :  { %1209 = vsyncpa [#allocation3], 1 }

</bundles_post_ra>
